<compile_context>
chip_gen: v7x
topology: tpu7x:2x2x1
jax: 0.10.0
libtpu: 0.0.40
codegen_flags: <defaults>
</compile_context>

<pallas_src>
import functools

import jax
import jax.numpy as jnp
from jax.experimental import pallas as pl
from jax.experimental.pallas import tpu as pltpu


# ---------------------------------------------------------------------------
# Fused kernel: one grid step == one batch element.
# ---------------------------------------------------------------------------
def _cross_attention_block_kernel(
    xo_ref, xe_ref, xl_ref,              # (1, N, D) chunks: origin / emap / lbp
    g_ref, beta_ref,                     # (1, D) LayerNorm gamma / beta
    wq_ref, bq_ref,                      # (D, D), (1, D)
    wk_ref, bk_ref,
    wv_ref, bv_ref,
    wo_ref, bo_ref,
    o_ref,                               # (1, N, D) output
    *, heads: int, scale: float, eps: float,
):
    xo = xo_ref[0].astype(jnp.float32)   # (N, D)
    xe = xe_ref[0].astype(jnp.float32)
    xl = xl_ref[0].astype(jnp.float32)

    gamma = g_ref[...].astype(jnp.float32)     # (1, D)
    beta = beta_ref[...].astype(jnp.float32)   # (1, D)

    def layernorm(x):
        mu = jnp.mean(x, axis=-1, keepdims=True)
        xc = x - mu
        var = jnp.mean(xc * xc, axis=-1, keepdims=True)
        return xc * jax.lax.rsqrt(var + eps) * gamma + beta

    h_o = layernorm(xo)                  # LN fused: never leaves VMEM
    h_e = layernorm(xe)
    h_l = layernorm(xl)

    wq = wq_ref[...].astype(jnp.float32)
    wk = wk_ref[...].astype(jnp.float32)
    wv = wv_ref[...].astype(jnp.float32)
    wo = wo_ref[...].astype(jnp.float32)
    bq = bq_ref[...].astype(jnp.float32)
    bk = bk_ref[...].astype(jnp.float32)
    bv = bv_ref[...].astype(jnp.float32)
    bo = bo_ref[...].astype(jnp.float32)

    # Q comes from the "origin" branch and is shared by both cross-attentions.
    q = jnp.dot(h_o, wq, preferred_element_type=jnp.float32) + bq   # (N, D)

    n_tok, d = q.shape
    dh = d // heads

    def cross_attend(h_kv):
        k = jnp.dot(h_kv, wk, preferred_element_type=jnp.float32) + bk
        v = jnp.dot(h_kv, wv, preferred_element_type=jnp.float32) + bv
        head_outs = []
        for hh in range(heads):                      # static unrolled head loop
            sl = slice(hh * dh, (hh + 1) * dh)
            qh, kh, vh = q[:, sl], k[:, sl], v[:, sl]
            # q @ k^T without an explicit transpose (contract last dims).
            dots = jax.lax.dot_general(
                qh, kh, (((1,), (1,)), ((), ())),
                preferred_element_type=jnp.float32) * scale
            dots = dots - jnp.max(dots, axis=-1, keepdims=True)
            p = jnp.exp(dots)
            p = p / jnp.sum(p, axis=-1, keepdims=True)
            head_outs.append(jnp.dot(p, vh, preferred_element_type=jnp.float32))
        att = jnp.concatenate(head_outs, axis=-1)                    # (N, D)
        return jnp.dot(att, wo, preferred_element_type=jnp.float32) + bo

    out = cross_attend(h_e) + cross_attend(h_l)      # final add fused too
    o_ref[0] = out.astype(o_ref.dtype)


# ---------------------------------------------------------------------------
# Wrapper: builds BlockSpecs so the three sequence chunks are picked straight
# out of the input array (no slicing / torch.cat-style copies in HBM).
# ---------------------------------------------------------------------------
def cross_attention_block_forward(x, params, *, heads, eps=1e-5, mask=None):
    if mask is not None:
        # TODO(synk): mask path not implemented (see module-level TODO).
        raise NotImplementedError("mask is not supported in the Pallas kernel")

    B, S, D = x.shape
    assert S % 3 == 0, "sequence must split into 3 equal chunks (origin/emap/lbp)"
    n = S // 3
    assert D % heads == 0
    scale = float(D) ** -0.5             # matches PyTorch: dim ** (-0.5)

    gamma = params["gamma"].reshape(1, D)
    beta = params["beta"].reshape(1, D)
    wq, wk, wv, wo = params["wq"], params["wk"], params["wv"], params["wo"]
    bq = params["bq"].reshape(1, D)
    bk = params["bk"].reshape(1, D)
    bv = params["bv"].reshape(1, D)
    bo = params["bo"].reshape(1, D)

    kernel = functools.partial(
        _cross_attention_block_kernel, heads=heads, scale=scale, eps=eps)

    def chunk_spec(c):
        # Select chunk `c` (block index along the sequence axis) of the SAME
        # input array -> no materialized slice/cat copies.
        return pl.BlockSpec((1, n, D), lambda b, c=c: (b, c, 0))

    def param_spec(shape):
        return pl.BlockSpec(shape, lambda b: (0, 0))

    out = pl.pallas_call(
        kernel,
        out_shape=jax.ShapeDtypeStruct((B, n, D), x.dtype),
        grid=(B,),
        in_specs=[
            chunk_spec(0), chunk_spec(1), chunk_spec(2),
            param_spec((1, D)), param_spec((1, D)),
            param_spec((D, D)), param_spec((1, D)),
            param_spec((D, D)), param_spec((1, D)),
            param_spec((D, D)), param_spec((1, D)),
            param_spec((D, D)), param_spec((1, D)),
        ],
        out_specs=pl.BlockSpec((1, n, D), lambda b: (b, 0, 0)),
        compiler_params=pltpu.CompilerParams(
            dimension_semantics=("parallel",),       # batch loop shards over TCs (v7x)
            vmem_limit_bytes=32 * 1024 * 1024,       # safe on v5e/v6e/v7x
        ),
    )(x, x, x, gamma, beta, wq, bq, wk, bk, wv, bv, wo, bo)
    return out


class CrossAttentionBlockPallas:
    """Pallas port of CrossAttentionBlock = LayerNormalize(CrossAttention) x2 + add."""

    def __init__(self, dim, heads, dropout, *, key, eps=1e-5):
        assert dim % heads == 0
        self.dim = dim
        self.heads = heads
        self.dropout = dropout           # identity in eval-mode forward
        self.eps = eps

        ks = jax.random.split(key, 10)

        def dense(k, shape, s=0.02):
            return jax.random.normal(k, shape, jnp.float32) * s

        self.params = {
            # non-trivial affine params so the LayerNorm scale/shift is exercised
            "gamma": 1.0 + 0.1 * jax.random.normal(ks[0], (dim,), jnp.float32),
            "beta": 0.1 * jax.random.normal(ks[1], (dim,), jnp.float32),
            "wq": dense(ks[2], (dim, dim)), "bq": dense(ks[3], (dim,), 0.01),
            "wk": dense(ks[4], (dim, dim)), "bk": dense(ks[5], (dim,), 0.01),
            "wv": dense(ks[6], (dim, dim)), "bv": dense(ks[7], (dim,), 0.01),
            "wo": dense(ks[8], (dim, dim)), "bo": dense(ks[9], (dim,), 0.01),
        }

    def __call__(self, x, mask=None):
        return cross_attention_block_forward(
            x, self.params, heads=self.heads, eps=self.eps, mask=mask)


# ---------------------------------------------------------------------------
# Pure-JAX reference (mirrors the PyTorch forward) for correctness checking.
# ---------------------------------------------------------------------------
def _reference_forward(x, params, *, heads, eps):
    B, S, D = x.shape
    n = S // 3
    gamma, beta = params["gamma"], params["beta"]
    scale = float(D) ** -0.5

    def ln(t):
        mu = jnp.mean(t, axis=-1, keepdims=True)
        var = jnp.mean((t - mu) ** 2, axis=-1, keepdims=True)
        return (t - mu) / jnp.sqrt(var + eps) * gamma + beta

    def cross(x1, x2):
        h1, h2 = ln(x1), ln(x2)
        q = h1 @ params["wq"] + params["bq"]
        k = h2 @ params["wk"] + params["bk"]
        v = h2 @ params["wv"] + params["bv"]
        dh = D // heads
        q = q.reshape(B, n, heads, dh).transpose(0, 2, 1, 3)
        k = k.reshape(B, n, heads, dh).transpose(0, 2, 1, 3)
        v = v.reshape(B, n, heads, dh).transpose(0, 2, 1, 3)
        dots = jnp.einsum("bhid,bhjd->bhij", q, k) * scale
        attn = jax.nn.softmax(dots, axis=-1)
        o = jnp.einsum("bhij,bhjd->bhid", attn, v)
        o = o.transpose(0, 2, 1, 3).reshape(B, n, D)
        return o @ params["wo"] + params["bo"]

    xo, xe, xl = x[:, :n], x[:, n:2 * n], x[:, 2 * n:]
    return cross(xo, xe) + cross(xo, xl)


if __name__ == "__main__":
    key = jax.random.PRNGKey(0)
    k_param, k_x = jax.random.split(key)

    # batch=2, 8 tokens per chunk (3 chunks -> seq=24), hidden=128 (lane-dense),
    # heads=8 (the PyTorch default).
    B, n, D, H = 2, 8, 128, 8
    S = 3 * n

    x = jax.random.normal(k_x, (B, S, D), jnp.float32)

    block = CrossAttentionBlockPallas(D, heads=H, dropout=0.1, key=k_param)
    out = jax.block_until_ready(block(x))

    ref = jax.block_until_ready(
        _reference_forward(x, block.params, heads=H, eps=block.eps))

    assert out.shape == (B, n, D)
    assert bool(jnp.allclose(out, ref, atol=2e-3, rtol=2e-2)), \
        float(jnp.max(jnp.abs(out - ref)))

    print("KERNEL_OK")
</pallas_src>

<mosaic_0001>
module attributes {stable_mosaic.version = 11 : i64} {
  func.func @_cross_attention_block_kernel(%arg0: i32, %arg1: memref<1x8x128xf32, #tpu.memory_space<vmem>>, %arg2: memref<1x8x128xf32, #tpu.memory_space<vmem>>, %arg3: memref<1x8x128xf32, #tpu.memory_space<vmem>>, %arg4: memref<1x128xf32, #tpu.memory_space<vmem>>, %arg5: memref<1x128xf32, #tpu.memory_space<vmem>>, %arg6: memref<128x128xf32, #tpu.memory_space<vmem>>, %arg7: memref<1x128xf32, #tpu.memory_space<vmem>>, %arg8: memref<128x128xf32, #tpu.memory_space<vmem>>, %arg9: memref<1x128xf32, #tpu.memory_space<vmem>>, %arg10: memref<128x128xf32, #tpu.memory_space<vmem>>, %arg11: memref<1x128xf32, #tpu.memory_space<vmem>>, %arg12: memref<128x128xf32, #tpu.memory_space<vmem>>, %arg13: memref<1x128xf32, #tpu.memory_space<vmem>>, %arg14: memref<1x8x128xf32, #tpu.memory_space<vmem>>) attributes {dimension_semantics = [#tpu.dimension_semantics<parallel>], iteration_bounds = array<i64: 2>, scalar_prefetch = 0 : i64, scratch_operands = 0 : i64, tpu.core_type = #tpu.core_type<tc>, window_params = [{transform_indices = @transform_0, window_bounds = array<i64: 1, 8, 128>}, {transform_indices = @transform_1, window_bounds = array<i64: 1, 8, 128>}, {transform_indices = @transform_2, window_bounds = array<i64: 1, 8, 128>}, {pipeline_mode = #tpu.pipeline_mode<synchronous>, transform_indices = @transform_3, window_bounds = array<i64: 1, 128>}, {pipeline_mode = #tpu.pipeline_mode<synchronous>, transform_indices = @transform_4, window_bounds = array<i64: 1, 128>}, {pipeline_mode = #tpu.pipeline_mode<synchronous>, transform_indices = @transform_5, window_bounds = array<i64: 128, 128>}, {pipeline_mode = #tpu.pipeline_mode<synchronous>, transform_indices = @transform_6, window_bounds = array<i64: 1, 128>}, {pipeline_mode = #tpu.pipeline_mode<synchronous>, transform_indices = @transform_7, window_bounds = array<i64: 128, 128>}, {pipeline_mode = #tpu.pipeline_mode<synchronous>, transform_indices = @transform_8, window_bounds = array<i64: 1, 128>}, {pipeline_mode = #tpu.pipeline_mode<synchronous>, transform_indices = @transform_9, window_bounds = array<i64: 128, 128>}, {pipeline_mode = #tpu.pipeline_mode<synchronous>, transform_indices = @transform_10, window_bounds = array<i64: 1, 128>}, {pipeline_mode = #tpu.pipeline_mode<synchronous>, transform_indices = @transform_11, window_bounds = array<i64: 128, 128>}, {pipeline_mode = #tpu.pipeline_mode<synchronous>, transform_indices = @transform_12, window_bounds = array<i64: 1, 128>}, {transform_indices = @transform_13, window_bounds = array<i64: 1, 8, 128>}]} {
    %c0 = arith.constant 0 : index
    %c0_0 = arith.constant 0 : index
    %c0_1 = arith.constant 0 : index
    %0 = vector.load %arg1[%c0, %c0_0, %c0_1] : memref<1x8x128xf32, #tpu.memory_space<vmem>>, vector<1x8x128xf32>
    %1 = vector.shape_cast %0 : vector<1x8x128xf32> to vector<8x128xf32>
    %c0_2 = arith.constant 0 : index
    %c0_3 = arith.constant 0 : index
    %c0_4 = arith.constant 0 : index
    %2 = vector.load %arg2[%c0_2, %c0_3, %c0_4] : memref<1x8x128xf32, #tpu.memory_space<vmem>>, vector<1x8x128xf32>
    %3 = vector.shape_cast %2 : vector<1x8x128xf32> to vector<8x128xf32>
    %c0_5 = arith.constant 0 : index
    %c0_6 = arith.constant 0 : index
    %c0_7 = arith.constant 0 : index
    %4 = vector.load %arg3[%c0_5, %c0_6, %c0_7] : memref<1x8x128xf32, #tpu.memory_space<vmem>>, vector<1x8x128xf32>
    %5 = vector.shape_cast %4 : vector<1x8x128xf32> to vector<8x128xf32>
    %c0_8 = arith.constant 0 : index
    %c0_9 = arith.constant 0 : index
    %6 = vector.load %arg4[%c0_8, %c0_9] : memref<1x128xf32, #tpu.memory_space<vmem>>, vector<1x128xf32>
    %c0_10 = arith.constant 0 : index
    %c0_11 = arith.constant 0 : index
    %7 = vector.load %arg5[%c0_10, %c0_11] : memref<1x128xf32, #tpu.memory_space<vmem>>, vector<1x128xf32>
    %cst = arith.constant dense<0.000000e+00> : vector<8xf32>
    %8 = vector.multi_reduction <add>, %1, %cst [1] : vector<8x128xf32> to vector<8xf32>
    %9 = vector.shape_cast %8 : vector<8xf32> to vector<8x1xf32>
    %cst_12 = arith.constant 1.280000e+02 : f32
    %10 = vector.broadcast %cst_12 : f32 to vector<8x1xf32>
    %11 = arith.divf %9, %10 : vector<8x1xf32>
    %12 = vector.broadcast %11 : vector<8x1xf32> to vector<8x128xf32>
    %13 = arith.subf %1, %12 : vector<8x128xf32>
    %14 = arith.mulf %13, %13 : vector<8x128xf32>
    %cst_13 = arith.constant dense<0.000000e+00> : vector<8xf32>
    %15 = vector.multi_reduction <add>, %14, %cst_13 [1] : vector<8x128xf32> to vector<8xf32>
    %16 = vector.shape_cast %15 : vector<8xf32> to vector<8x1xf32>
    %cst_14 = arith.constant 1.280000e+02 : f32
    %17 = vector.broadcast %cst_14 : f32 to vector<8x1xf32>
    %18 = arith.divf %16, %17 : vector<8x1xf32>
    %cst_15 = arith.constant 9.99999974E-6 : f32
    %19 = vector.broadcast %cst_15 : f32 to vector<8x1xf32>
    %20 = arith.addf %18, %19 : vector<8x1xf32>
    %21 = math.rsqrt %20 : vector<8x1xf32>
    %22 = vector.broadcast %21 : vector<8x1xf32> to vector<8x128xf32>
    %23 = arith.mulf %13, %22 : vector<8x128xf32>
    %24 = vector.broadcast %6 : vector<1x128xf32> to vector<8x128xf32>
    %25 = arith.mulf %23, %24 : vector<8x128xf32>
    %26 = vector.broadcast %7 : vector<1x128xf32> to vector<8x128xf32>
    %27 = arith.addf %25, %26 : vector<8x128xf32>
    %cst_16 = arith.constant dense<0.000000e+00> : vector<8xf32>
    %28 = vector.multi_reduction <add>, %3, %cst_16 [1] : vector<8x128xf32> to vector<8xf32>
    %29 = vector.shape_cast %28 : vector<8xf32> to vector<8x1xf32>
    %cst_17 = arith.constant 1.280000e+02 : f32
    %30 = vector.broadcast %cst_17 : f32 to vector<8x1xf32>
    %31 = arith.divf %29, %30 : vector<8x1xf32>
    %32 = vector.broadcast %31 : vector<8x1xf32> to vector<8x128xf32>
    %33 = arith.subf %3, %32 : vector<8x128xf32>
    %34 = arith.mulf %33, %33 : vector<8x128xf32>
    %cst_18 = arith.constant dense<0.000000e+00> : vector<8xf32>
    %35 = vector.multi_reduction <add>, %34, %cst_18 [1] : vector<8x128xf32> to vector<8xf32>
    %36 = vector.shape_cast %35 : vector<8xf32> to vector<8x1xf32>
    %cst_19 = arith.constant 1.280000e+02 : f32
    %37 = vector.broadcast %cst_19 : f32 to vector<8x1xf32>
    %38 = arith.divf %36, %37 : vector<8x1xf32>
    %cst_20 = arith.constant 9.99999974E-6 : f32
    %39 = vector.broadcast %cst_20 : f32 to vector<8x1xf32>
    %40 = arith.addf %38, %39 : vector<8x1xf32>
    %41 = math.rsqrt %40 : vector<8x1xf32>
    %42 = vector.broadcast %41 : vector<8x1xf32> to vector<8x128xf32>
    %43 = arith.mulf %33, %42 : vector<8x128xf32>
    %44 = vector.broadcast %6 : vector<1x128xf32> to vector<8x128xf32>
    %45 = arith.mulf %43, %44 : vector<8x128xf32>
    %46 = vector.broadcast %7 : vector<1x128xf32> to vector<8x128xf32>
    %47 = arith.addf %45, %46 : vector<8x128xf32>
    %cst_21 = arith.constant dense<0.000000e+00> : vector<8xf32>
    %48 = vector.multi_reduction <add>, %5, %cst_21 [1] : vector<8x128xf32> to vector<8xf32>
    %49 = vector.shape_cast %48 : vector<8xf32> to vector<8x1xf32>
    %cst_22 = arith.constant 1.280000e+02 : f32
    %50 = vector.broadcast %cst_22 : f32 to vector<8x1xf32>
    %51 = arith.divf %49, %50 : vector<8x1xf32>
    %52 = vector.broadcast %51 : vector<8x1xf32> to vector<8x128xf32>
    %53 = arith.subf %5, %52 : vector<8x128xf32>
    %54 = arith.mulf %53, %53 : vector<8x128xf32>
    %cst_23 = arith.constant dense<0.000000e+00> : vector<8xf32>
    %55 = vector.multi_reduction <add>, %54, %cst_23 [1] : vector<8x128xf32> to vector<8xf32>
    %56 = vector.shape_cast %55 : vector<8xf32> to vector<8x1xf32>
    %cst_24 = arith.constant 1.280000e+02 : f32
    %57 = vector.broadcast %cst_24 : f32 to vector<8x1xf32>
    %58 = arith.divf %56, %57 : vector<8x1xf32>
    %cst_25 = arith.constant 9.99999974E-6 : f32
    %59 = vector.broadcast %cst_25 : f32 to vector<8x1xf32>
    %60 = arith.addf %58, %59 : vector<8x1xf32>
    %61 = math.rsqrt %60 : vector<8x1xf32>
    %62 = vector.broadcast %61 : vector<8x1xf32> to vector<8x128xf32>
    %63 = arith.mulf %53, %62 : vector<8x128xf32>
    %64 = vector.broadcast %6 : vector<1x128xf32> to vector<8x128xf32>
    %65 = arith.mulf %63, %64 : vector<8x128xf32>
    %66 = vector.broadcast %7 : vector<1x128xf32> to vector<8x128xf32>
    %67 = arith.addf %65, %66 : vector<8x128xf32>
    %c0_26 = arith.constant 0 : index
    %c0_27 = arith.constant 0 : index
    %68 = vector.load %arg6[%c0_26, %c0_27] : memref<128x128xf32, #tpu.memory_space<vmem>>, vector<128x128xf32>
    %c0_28 = arith.constant 0 : index
    %c0_29 = arith.constant 0 : index
    %69 = vector.load %arg8[%c0_28, %c0_29] : memref<128x128xf32, #tpu.memory_space<vmem>>, vector<128x128xf32>
    %c0_30 = arith.constant 0 : index
    %c0_31 = arith.constant 0 : index
    %70 = vector.load %arg10[%c0_30, %c0_31] : memref<128x128xf32, #tpu.memory_space<vmem>>, vector<128x128xf32>
    %c0_32 = arith.constant 0 : index
    %c0_33 = arith.constant 0 : index
    %71 = vector.load %arg12[%c0_32, %c0_33] : memref<128x128xf32, #tpu.memory_space<vmem>>, vector<128x128xf32>
    %c0_34 = arith.constant 0 : index
    %c0_35 = arith.constant 0 : index
    %72 = vector.load %arg7[%c0_34, %c0_35] : memref<1x128xf32, #tpu.memory_space<vmem>>, vector<1x128xf32>
    %c0_36 = arith.constant 0 : index
    %c0_37 = arith.constant 0 : index
    %73 = vector.load %arg9[%c0_36, %c0_37] : memref<1x128xf32, #tpu.memory_space<vmem>>, vector<1x128xf32>
    %c0_38 = arith.constant 0 : index
    %c0_39 = arith.constant 0 : index
    %74 = vector.load %arg11[%c0_38, %c0_39] : memref<1x128xf32, #tpu.memory_space<vmem>>, vector<1x128xf32>
    %c0_40 = arith.constant 0 : index
    %c0_41 = arith.constant 0 : index
    %75 = vector.load %arg13[%c0_40, %c0_41] : memref<1x128xf32, #tpu.memory_space<vmem>>, vector<1x128xf32>
    %cst_42 = arith.constant dense<0.000000e+00> : vector<8x128xf32>
    %76 = tpu.matmul %27, %68, %cst_42 {dimension_numbers = #tpu.dot_dimension_numbers<[1], [0], [0], [1], [0, 0, 1, 1], [], []>} : vector<8x128xf32>, vector<128x128xf32>, vector<8x128xf32> -> vector<8x128xf32>
    %77 = vector.broadcast %72 : vector<1x128xf32> to vector<8x128xf32>
    %78 = arith.addf %76, %77 : vector<8x128xf32>
    %cst_43 = arith.constant dense<0.000000e+00> : vector<8x128xf32>
    %79 = tpu.matmul %47, %69, %cst_43 {dimension_numbers = #tpu.dot_dimension_numbers<[1], [0], [0], [1], [0, 0, 1, 1], [], []>} : vector<8x128xf32>, vector<128x128xf32>, vector<8x128xf32> -> vector<8x128xf32>
    %80 = vector.broadcast %73 : vector<1x128xf32> to vector<8x128xf32>
    %81 = arith.addf %79, %80 : vector<8x128xf32>
    %cst_44 = arith.constant dense<0.000000e+00> : vector<8x128xf32>
    %82 = tpu.matmul %47, %70, %cst_44 {dimension_numbers = #tpu.dot_dimension_numbers<[1], [0], [0], [1], [0, 0, 1, 1], [], []>} : vector<8x128xf32>, vector<128x128xf32>, vector<8x128xf32> -> vector<8x128xf32>
    %83 = vector.broadcast %74 : vector<1x128xf32> to vector<8x128xf32>
    %84 = arith.addf %82, %83 : vector<8x128xf32>
    %85 = vector.extract_strided_slice %78 {offsets = [0, 0], sizes = [8, 16], strides = [1, 1]} : vector<8x128xf32> to vector<8x16xf32>
    %86 = vector.extract_strided_slice %81 {offsets = [0, 0], sizes = [8, 16], strides = [1, 1]} : vector<8x128xf32> to vector<8x16xf32>
    %87 = vector.extract_strided_slice %84 {offsets = [0, 0], sizes = [8, 16], strides = [1, 1]} : vector<8x128xf32> to vector<8x16xf32>
    %cst_45 = arith.constant dense<0.000000e+00> : vector<8x8xf32>
    %88 = tpu.matmul %85, %86, %cst_45 {dimension_numbers = #tpu.dot_dimension_numbers<[1], [1], [0], [0], [0, 0, 1, 0], [], []>} : vector<8x16xf32>, vector<8x16xf32>, vector<8x8xf32> -> vector<8x8xf32>
    %cst_46 = arith.constant 0.0883883461 : f32
    %89 = vector.broadcast %cst_46 : f32 to vector<8x8xf32>
    %90 = arith.mulf %88, %89 : vector<8x8xf32>
    %cst_47 = arith.constant dense<0xFF800000> : vector<8xf32>
    %91 = vector.multi_reduction <maximumf>, %90, %cst_47 [1] : vector<8x8xf32> to vector<8xf32>
    %92 = vector.shape_cast %91 : vector<8xf32> to vector<8x1xf32>
    %93 = vector.broadcast %92 : vector<8x1xf32> to vector<8x8xf32>
    %94 = arith.subf %90, %93 : vector<8x8xf32>
    %95 = math.exp %94 : vector<8x8xf32>
    %cst_48 = arith.constant dense<0.000000e+00> : vector<8xf32>
    %96 = vector.multi_reduction <add>, %95, %cst_48 [1] : vector<8x8xf32> to vector<8xf32>
    %97 = vector.shape_cast %96 : vector<8xf32> to vector<8x1xf32>
    %98 = vector.broadcast %97 : vector<8x1xf32> to vector<8x8xf32>
    %99 = arith.divf %95, %98 : vector<8x8xf32>
    %cst_49 = arith.constant dense<0.000000e+00> : vector<8x16xf32>
    %100 = tpu.matmul %99, %87, %cst_49 {dimension_numbers = #tpu.dot_dimension_numbers<[1], [0], [0], [1], [0, 0, 1, 1], [], []>} : vector<8x8xf32>, vector<8x16xf32>, vector<8x16xf32> -> vector<8x16xf32>
    %101 = vector.extract_strided_slice %78 {offsets = [0, 16], sizes = [8, 16], strides = [1, 1]} : vector<8x128xf32> to vector<8x16xf32>
    %102 = vector.extract_strided_slice %81 {offsets = [0, 16], sizes = [8, 16], strides = [1, 1]} : vector<8x128xf32> to vector<8x16xf32>
    %103 = vector.extract_strided_slice %84 {offsets = [0, 16], sizes = [8, 16], strides = [1, 1]} : vector<8x128xf32> to vector<8x16xf32>
    %cst_50 = arith.constant dense<0.000000e+00> : vector<8x8xf32>
    %104 = tpu.matmul %101, %102, %cst_50 {dimension_numbers = #tpu.dot_dimension_numbers<[1], [1], [0], [0], [0, 0, 1, 0], [], []>} : vector<8x16xf32>, vector<8x16xf32>, vector<8x8xf32> -> vector<8x8xf32>
    %cst_51 = arith.constant 0.0883883461 : f32
    %105 = vector.broadcast %cst_51 : f32 to vector<8x8xf32>
    %106 = arith.mulf %104, %105 : vector<8x8xf32>
    %cst_52 = arith.constant dense<0xFF800000> : vector<8xf32>
    %107 = vector.multi_reduction <maximumf>, %106, %cst_52 [1] : vector<8x8xf32> to vector<8xf32>
    %108 = vector.shape_cast %107 : vector<8xf32> to vector<8x1xf32>
    %109 = vector.broadcast %108 : vector<8x1xf32> to vector<8x8xf32>
    %110 = arith.subf %106, %109 : vector<8x8xf32>
    %111 = math.exp %110 : vector<8x8xf32>
    %cst_53 = arith.constant dense<0.000000e+00> : vector<8xf32>
    %112 = vector.multi_reduction <add>, %111, %cst_53 [1] : vector<8x8xf32> to vector<8xf32>
    %113 = vector.shape_cast %112 : vector<8xf32> to vector<8x1xf32>
    %114 = vector.broadcast %113 : vector<8x1xf32> to vector<8x8xf32>
    %115 = arith.divf %111, %114 : vector<8x8xf32>
    %cst_54 = arith.constant dense<0.000000e+00> : vector<8x16xf32>
    %116 = tpu.matmul %115, %103, %cst_54 {dimension_numbers = #tpu.dot_dimension_numbers<[1], [0], [0], [1], [0, 0, 1, 1], [], []>} : vector<8x8xf32>, vector<8x16xf32>, vector<8x16xf32> -> vector<8x16xf32>
    %117 = vector.extract_strided_slice %78 {offsets = [0, 32], sizes = [8, 16], strides = [1, 1]} : vector<8x128xf32> to vector<8x16xf32>
    %118 = vector.extract_strided_slice %81 {offsets = [0, 32], sizes = [8, 16], strides = [1, 1]} : vector<8x128xf32> to vector<8x16xf32>
    %119 = vector.extract_strided_slice %84 {offsets = [0, 32], sizes = [8, 16], strides = [1, 1]} : vector<8x128xf32> to vector<8x16xf32>
    %cst_55 = arith.constant dense<0.000000e+00> : vector<8x8xf32>
    %120 = tpu.matmul %117, %118, %cst_55 {dimension_numbers = #tpu.dot_dimension_numbers<[1], [1], [0], [0], [0, 0, 1, 0], [], []>} : vector<8x16xf32>, vector<8x16xf32>, vector<8x8xf32> -> vector<8x8xf32>
    %cst_56 = arith.constant 0.0883883461 : f32
    %121 = vector.broadcast %cst_56 : f32 to vector<8x8xf32>
    %122 = arith.mulf %120, %121 : vector<8x8xf32>
    %cst_57 = arith.constant dense<0xFF800000> : vector<8xf32>
    %123 = vector.multi_reduction <maximumf>, %122, %cst_57 [1] : vector<8x8xf32> to vector<8xf32>
    %124 = vector.shape_cast %123 : vector<8xf32> to vector<8x1xf32>
    %125 = vector.broadcast %124 : vector<8x1xf32> to vector<8x8xf32>
    %126 = arith.subf %122, %125 : vector<8x8xf32>
    %127 = math.exp %126 : vector<8x8xf32>
    %cst_58 = arith.constant dense<0.000000e+00> : vector<8xf32>
    %128 = vector.multi_reduction <add>, %127, %cst_58 [1] : vector<8x8xf32> to vector<8xf32>
    %129 = vector.shape_cast %128 : vector<8xf32> to vector<8x1xf32>
    %130 = vector.broadcast %129 : vector<8x1xf32> to vector<8x8xf32>
    %131 = arith.divf %127, %130 : vector<8x8xf32>
    %cst_59 = arith.constant dense<0.000000e+00> : vector<8x16xf32>
    %132 = tpu.matmul %131, %119, %cst_59 {dimension_numbers = #tpu.dot_dimension_numbers<[1], [0], [0], [1], [0, 0, 1, 1], [], []>} : vector<8x8xf32>, vector<8x16xf32>, vector<8x16xf32> -> vector<8x16xf32>
    %133 = vector.extract_strided_slice %78 {offsets = [0, 48], sizes = [8, 16], strides = [1, 1]} : vector<8x128xf32> to vector<8x16xf32>
    %134 = vector.extract_strided_slice %81 {offsets = [0, 48], sizes = [8, 16], strides = [1, 1]} : vector<8x128xf32> to vector<8x16xf32>
    %135 = vector.extract_strided_slice %84 {offsets = [0, 48], sizes = [8, 16], strides = [1, 1]} : vector<8x128xf32> to vector<8x16xf32>
    %cst_60 = arith.constant dense<0.000000e+00> : vector<8x8xf32>
    %136 = tpu.matmul %133, %134, %cst_60 {dimension_numbers = #tpu.dot_dimension_numbers<[1], [1], [0], [0], [0, 0, 1, 0], [], []>} : vector<8x16xf32>, vector<8x16xf32>, vector<8x8xf32> -> vector<8x8xf32>
    %cst_61 = arith.constant 0.0883883461 : f32
    %137 = vector.broadcast %cst_61 : f32 to vector<8x8xf32>
    %138 = arith.mulf %136, %137 : vector<8x8xf32>
    %cst_62 = arith.constant dense<0xFF800000> : vector<8xf32>
    %139 = vector.multi_reduction <maximumf>, %138, %cst_62 [1] : vector<8x8xf32> to vector<8xf32>
    %140 = vector.shape_cast %139 : vector<8xf32> to vector<8x1xf32>
    %141 = vector.broadcast %140 : vector<8x1xf32> to vector<8x8xf32>
    %142 = arith.subf %138, %141 : vector<8x8xf32>
    %143 = math.exp %142 : vector<8x8xf32>
    %cst_63 = arith.constant dense<0.000000e+00> : vector<8xf32>
    %144 = vector.multi_reduction <add>, %143, %cst_63 [1] : vector<8x8xf32> to vector<8xf32>
    %145 = vector.shape_cast %144 : vector<8xf32> to vector<8x1xf32>
    %146 = vector.broadcast %145 : vector<8x1xf32> to vector<8x8xf32>
    %147 = arith.divf %143, %146 : vector<8x8xf32>
    %cst_64 = arith.constant dense<0.000000e+00> : vector<8x16xf32>
    %148 = tpu.matmul %147, %135, %cst_64 {dimension_numbers = #tpu.dot_dimension_numbers<[1], [0], [0], [1], [0, 0, 1, 1], [], []>} : vector<8x8xf32>, vector<8x16xf32>, vector<8x16xf32> -> vector<8x16xf32>
    %149 = vector.extract_strided_slice %78 {offsets = [0, 64], sizes = [8, 16], strides = [1, 1]} : vector<8x128xf32> to vector<8x16xf32>
    %150 = vector.extract_strided_slice %81 {offsets = [0, 64], sizes = [8, 16], strides = [1, 1]} : vector<8x128xf32> to vector<8x16xf32>
    %151 = vector.extract_strided_slice %84 {offsets = [0, 64], sizes = [8, 16], strides = [1, 1]} : vector<8x128xf32> to vector<8x16xf32>
    %cst_65 = arith.constant dense<0.000000e+00> : vector<8x8xf32>
    %152 = tpu.matmul %149, %150, %cst_65 {dimension_numbers = #tpu.dot_dimension_numbers<[1], [1], [0], [0], [0, 0, 1, 0], [], []>} : vector<8x16xf32>, vector<8x16xf32>, vector<8x8xf32> -> vector<8x8xf32>
    %cst_66 = arith.constant 0.0883883461 : f32
    %153 = vector.broadcast %cst_66 : f32 to vector<8x8xf32>
    %154 = arith.mulf %152, %153 : vector<8x8xf32>
    %cst_67 = arith.constant dense<0xFF800000> : vector<8xf32>
    %155 = vector.multi_reduction <maximumf>, %154, %cst_67 [1] : vector<8x8xf32> to vector<8xf32>
    %156 = vector.shape_cast %155 : vector<8xf32> to vector<8x1xf32>
    %157 = vector.broadcast %156 : vector<8x1xf32> to vector<8x8xf32>
    %158 = arith.subf %154, %157 : vector<8x8xf32>
    %159 = math.exp %158 : vector<8x8xf32>
    %cst_68 = arith.constant dense<0.000000e+00> : vector<8xf32>
    %160 = vector.multi_reduction <add>, %159, %cst_68 [1] : vector<8x8xf32> to vector<8xf32>
    %161 = vector.shape_cast %160 : vector<8xf32> to vector<8x1xf32>
    %162 = vector.broadcast %161 : vector<8x1xf32> to vector<8x8xf32>
    %163 = arith.divf %159, %162 : vector<8x8xf32>
    %cst_69 = arith.constant dense<0.000000e+00> : vector<8x16xf32>
    %164 = tpu.matmul %163, %151, %cst_69 {dimension_numbers = #tpu.dot_dimension_numbers<[1], [0], [0], [1], [0, 0, 1, 1], [], []>} : vector<8x8xf32>, vector<8x16xf32>, vector<8x16xf32> -> vector<8x16xf32>
    %165 = vector.extract_strided_slice %78 {offsets = [0, 80], sizes = [8, 16], strides = [1, 1]} : vector<8x128xf32> to vector<8x16xf32>
    %166 = vector.extract_strided_slice %81 {offsets = [0, 80], sizes = [8, 16], strides = [1, 1]} : vector<8x128xf32> to vector<8x16xf32>
    %167 = vector.extract_strided_slice %84 {offsets = [0, 80], sizes = [8, 16], strides = [1, 1]} : vector<8x128xf32> to vector<8x16xf32>
    %cst_70 = arith.constant dense<0.000000e+00> : vector<8x8xf32>
    %168 = tpu.matmul %165, %166, %cst_70 {dimension_numbers = #tpu.dot_dimension_numbers<[1], [1], [0], [0], [0, 0, 1, 0], [], []>} : vector<8x16xf32>, vector<8x16xf32>, vector<8x8xf32> -> vector<8x8xf32>
    %cst_71 = arith.constant 0.0883883461 : f32
    %169 = vector.broadcast %cst_71 : f32 to vector<8x8xf32>
    %170 = arith.mulf %168, %169 : vector<8x8xf32>
    %cst_72 = arith.constant dense<0xFF800000> : vector<8xf32>
    %171 = vector.multi_reduction <maximumf>, %170, %cst_72 [1] : vector<8x8xf32> to vector<8xf32>
    %172 = vector.shape_cast %171 : vector<8xf32> to vector<8x1xf32>
    %173 = vector.broadcast %172 : vector<8x1xf32> to vector<8x8xf32>
    %174 = arith.subf %170, %173 : vector<8x8xf32>
    %175 = math.exp %174 : vector<8x8xf32>
    %cst_73 = arith.constant dense<0.000000e+00> : vector<8xf32>
    %176 = vector.multi_reduction <add>, %175, %cst_73 [1] : vector<8x8xf32> to vector<8xf32>
    %177 = vector.shape_cast %176 : vector<8xf32> to vector<8x1xf32>
    %178 = vector.broadcast %177 : vector<8x1xf32> to vector<8x8xf32>
    %179 = arith.divf %175, %178 : vector<8x8xf32>
    %cst_74 = arith.constant dense<0.000000e+00> : vector<8x16xf32>
    %180 = tpu.matmul %179, %167, %cst_74 {dimension_numbers = #tpu.dot_dimension_numbers<[1], [0], [0], [1], [0, 0, 1, 1], [], []>} : vector<8x8xf32>, vector<8x16xf32>, vector<8x16xf32> -> vector<8x16xf32>
    %181 = vector.extract_strided_slice %78 {offsets = [0, 96], sizes = [8, 16], strides = [1, 1]} : vector<8x128xf32> to vector<8x16xf32>
    %182 = vector.extract_strided_slice %81 {offsets = [0, 96], sizes = [8, 16], strides = [1, 1]} : vector<8x128xf32> to vector<8x16xf32>
    %183 = vector.extract_strided_slice %84 {offsets = [0, 96], sizes = [8, 16], strides = [1, 1]} : vector<8x128xf32> to vector<8x16xf32>
    %cst_75 = arith.constant dense<0.000000e+00> : vector<8x8xf32>
    %184 = tpu.matmul %181, %182, %cst_75 {dimension_numbers = #tpu.dot_dimension_numbers<[1], [1], [0], [0], [0, 0, 1, 0], [], []>} : vector<8x16xf32>, vector<8x16xf32>, vector<8x8xf32> -> vector<8x8xf32>
    %cst_76 = arith.constant 0.0883883461 : f32
    %185 = vector.broadcast %cst_76 : f32 to vector<8x8xf32>
    %186 = arith.mulf %184, %185 : vector<8x8xf32>
    %cst_77 = arith.constant dense<0xFF800000> : vector<8xf32>
    %187 = vector.multi_reduction <maximumf>, %186, %cst_77 [1] : vector<8x8xf32> to vector<8xf32>
    %188 = vector.shape_cast %187 : vector<8xf32> to vector<8x1xf32>
    %189 = vector.broadcast %188 : vector<8x1xf32> to vector<8x8xf32>
    %190 = arith.subf %186, %189 : vector<8x8xf32>
    %191 = math.exp %190 : vector<8x8xf32>
    %cst_78 = arith.constant dense<0.000000e+00> : vector<8xf32>
    %192 = vector.multi_reduction <add>, %191, %cst_78 [1] : vector<8x8xf32> to vector<8xf32>
    %193 = vector.shape_cast %192 : vector<8xf32> to vector<8x1xf32>
    %194 = vector.broadcast %193 : vector<8x1xf32> to vector<8x8xf32>
    %195 = arith.divf %191, %194 : vector<8x8xf32>
    %cst_79 = arith.constant dense<0.000000e+00> : vector<8x16xf32>
    %196 = tpu.matmul %195, %183, %cst_79 {dimension_numbers = #tpu.dot_dimension_numbers<[1], [0], [0], [1], [0, 0, 1, 1], [], []>} : vector<8x8xf32>, vector<8x16xf32>, vector<8x16xf32> -> vector<8x16xf32>
    %197 = vector.extract_strided_slice %78 {offsets = [0, 112], sizes = [8, 16], strides = [1, 1]} : vector<8x128xf32> to vector<8x16xf32>
    %198 = vector.extract_strided_slice %81 {offsets = [0, 112], sizes = [8, 16], strides = [1, 1]} : vector<8x128xf32> to vector<8x16xf32>
    %199 = vector.extract_strided_slice %84 {offsets = [0, 112], sizes = [8, 16], strides = [1, 1]} : vector<8x128xf32> to vector<8x16xf32>
    %cst_80 = arith.constant dense<0.000000e+00> : vector<8x8xf32>
    %200 = tpu.matmul %197, %198, %cst_80 {dimension_numbers = #tpu.dot_dimension_numbers<[1], [1], [0], [0], [0, 0, 1, 0], [], []>} : vector<8x16xf32>, vector<8x16xf32>, vector<8x8xf32> -> vector<8x8xf32>
    %cst_81 = arith.constant 0.0883883461 : f32
    %201 = vector.broadcast %cst_81 : f32 to vector<8x8xf32>
    %202 = arith.mulf %200, %201 : vector<8x8xf32>
    %cst_82 = arith.constant dense<0xFF800000> : vector<8xf32>
    %203 = vector.multi_reduction <maximumf>, %202, %cst_82 [1] : vector<8x8xf32> to vector<8xf32>
    %204 = vector.shape_cast %203 : vector<8xf32> to vector<8x1xf32>
    %205 = vector.broadcast %204 : vector<8x1xf32> to vector<8x8xf32>
    %206 = arith.subf %202, %205 : vector<8x8xf32>
    %207 = math.exp %206 : vector<8x8xf32>
    %cst_83 = arith.constant dense<0.000000e+00> : vector<8xf32>
    %208 = vector.multi_reduction <add>, %207, %cst_83 [1] : vector<8x8xf32> to vector<8xf32>
    %209 = vector.shape_cast %208 : vector<8xf32> to vector<8x1xf32>
    %210 = vector.broadcast %209 : vector<8x1xf32> to vector<8x8xf32>
    %211 = arith.divf %207, %210 : vector<8x8xf32>
    %cst_84 = arith.constant dense<0.000000e+00> : vector<8x16xf32>
    %212 = tpu.matmul %211, %199, %cst_84 {dimension_numbers = #tpu.dot_dimension_numbers<[1], [0], [0], [1], [0, 0, 1, 1], [], []>} : vector<8x8xf32>, vector<8x16xf32>, vector<8x16xf32> -> vector<8x16xf32>
    %213 = tpu.concatenate %100, %116, %132, %148, %164, %180, %196, %212 in 1 : vector<8x16xf32>, vector<8x16xf32>, vector<8x16xf32>, vector<8x16xf32>, vector<8x16xf32>, vector<8x16xf32>, vector<8x16xf32>, vector<8x16xf32> -> vector<8x128xf32>
    %cst_85 = arith.constant dense<0.000000e+00> : vector<8x128xf32>
    %214 = tpu.matmul %213, %71, %cst_85 {dimension_numbers = #tpu.dot_dimension_numbers<[1], [0], [0], [1], [0, 0, 1, 1], [], []>} : vector<8x128xf32>, vector<128x128xf32>, vector<8x128xf32> -> vector<8x128xf32>
    %215 = vector.broadcast %75 : vector<1x128xf32> to vector<8x128xf32>
    %216 = arith.addf %214, %215 : vector<8x128xf32>
    %cst_86 = arith.constant dense<0.000000e+00> : vector<8x128xf32>
    %217 = tpu.matmul %67, %69, %cst_86 {dimension_numbers = #tpu.dot_dimension_numbers<[1], [0], [0], [1], [0, 0, 1, 1], [], []>} : vector<8x128xf32>, vector<128x128xf32>, vector<8x128xf32> -> vector<8x128xf32>
    %218 = vector.broadcast %73 : vector<1x128xf32> to vector<8x128xf32>
    %219 = arith.addf %217, %218 : vector<8x128xf32>
    %cst_87 = arith.constant dense<0.000000e+00> : vector<8x128xf32>
    %220 = tpu.matmul %67, %70, %cst_87 {dimension_numbers = #tpu.dot_dimension_numbers<[1], [0], [0], [1], [0, 0, 1, 1], [], []>} : vector<8x128xf32>, vector<128x128xf32>, vector<8x128xf32> -> vector<8x128xf32>
    %221 = vector.broadcast %74 : vector<1x128xf32> to vector<8x128xf32>
    %222 = arith.addf %220, %221 : vector<8x128xf32>
    %223 = vector.extract_strided_slice %78 {offsets = [0, 0], sizes = [8, 16], strides = [1, 1]} : vector<8x128xf32> to vector<8x16xf32>
    %224 = vector.extract_strided_slice %219 {offsets = [0, 0], sizes = [8, 16], strides = [1, 1]} : vector<8x128xf32> to vector<8x16xf32>
    %225 = vector.extract_strided_slice %222 {offsets = [0, 0], sizes = [8, 16], strides = [1, 1]} : vector<8x128xf32> to vector<8x16xf32>
    %cst_88 = arith.constant dense<0.000000e+00> : vector<8x8xf32>
    %226 = tpu.matmul %223, %224, %cst_88 {dimension_numbers = #tpu.dot_dimension_numbers<[1], [1], [0], [0], [0, 0, 1, 0], [], []>} : vector<8x16xf32>, vector<8x16xf32>, vector<8x8xf32> -> vector<8x8xf32>
    %cst_89 = arith.constant 0.0883883461 : f32
    %227 = vector.broadcast %cst_89 : f32 to vector<8x8xf32>
    %228 = arith.mulf %226, %227 : vector<8x8xf32>
    %cst_90 = arith.constant dense<0xFF800000> : vector<8xf32>
    %229 = vector.multi_reduction <maximumf>, %228, %cst_90 [1] : vector<8x8xf32> to vector<8xf32>
    %230 = vector.shape_cast %229 : vector<8xf32> to vector<8x1xf32>
    %231 = vector.broadcast %230 : vector<8x1xf32> to vector<8x8xf32>
    %232 = arith.subf %228, %231 : vector<8x8xf32>
    %233 = math.exp %232 : vector<8x8xf32>
    %cst_91 = arith.constant dense<0.000000e+00> : vector<8xf32>
    %234 = vector.multi_reduction <add>, %233, %cst_91 [1] : vector<8x8xf32> to vector<8xf32>
    %235 = vector.shape_cast %234 : vector<8xf32> to vector<8x1xf32>
    %236 = vector.broadcast %235 : vector<8x1xf32> to vector<8x8xf32>
    %237 = arith.divf %233, %236 : vector<8x8xf32>
    %cst_92 = arith.constant dense<0.000000e+00> : vector<8x16xf32>
    %238 = tpu.matmul %237, %225, %cst_92 {dimension_numbers = #tpu.dot_dimension_numbers<[1], [0], [0], [1], [0, 0, 1, 1], [], []>} : vector<8x8xf32>, vector<8x16xf32>, vector<8x16xf32> -> vector<8x16xf32>
    %239 = vector.extract_strided_slice %78 {offsets = [0, 16], sizes = [8, 16], strides = [1, 1]} : vector<8x128xf32> to vector<8x16xf32>
    %240 = vector.extract_strided_slice %219 {offsets = [0, 16], sizes = [8, 16], strides = [1, 1]} : vector<8x128xf32> to vector<8x16xf32>
    %241 = vector.extract_strided_slice %222 {offsets = [0, 16], sizes = [8, 16], strides = [1, 1]} : vector<8x128xf32> to vector<8x16xf32>
    %cst_93 = arith.constant dense<0.000000e+00> : vector<8x8xf32>
    %242 = tpu.matmul %239, %240, %cst_93 {dimension_numbers = #tpu.dot_dimension_numbers<[1], [1], [0], [0], [0, 0, 1, 0], [], []>} : vector<8x16xf32>, vector<8x16xf32>, vector<8x8xf32> -> vector<8x8xf32>
    %cst_94 = arith.constant 0.0883883461 : f32
    %243 = vector.broadcast %cst_94 : f32 to vector<8x8xf32>
    %244 = arith.mulf %242, %243 : vector<8x8xf32>
    %cst_95 = arith.constant dense<0xFF800000> : vector<8xf32>
    %245 = vector.multi_reduction <maximumf>, %244, %cst_95 [1] : vector<8x8xf32> to vector<8xf32>
    %246 = vector.shape_cast %245 : vector<8xf32> to vector<8x1xf32>
    %247 = vector.broadcast %246 : vector<8x1xf32> to vector<8x8xf32>
    %248 = arith.subf %244, %247 : vector<8x8xf32>
    %249 = math.exp %248 : vector<8x8xf32>
    %cst_96 = arith.constant dense<0.000000e+00> : vector<8xf32>
    %250 = vector.multi_reduction <add>, %249, %cst_96 [1] : vector<8x8xf32> to vector<8xf32>
    %251 = vector.shape_cast %250 : vector<8xf32> to vector<8x1xf32>
    %252 = vector.broadcast %251 : vector<8x1xf32> to vector<8x8xf32>
    %253 = arith.divf %249, %252 : vector<8x8xf32>
    %cst_97 = arith.constant dense<0.000000e+00> : vector<8x16xf32>
    %254 = tpu.matmul %253, %241, %cst_97 {dimension_numbers = #tpu.dot_dimension_numbers<[1], [0], [0], [1], [0, 0, 1, 1], [], []>} : vector<8x8xf32>, vector<8x16xf32>, vector<8x16xf32> -> vector<8x16xf32>
    %255 = vector.extract_strided_slice %78 {offsets = [0, 32], sizes = [8, 16], strides = [1, 1]} : vector<8x128xf32> to vector<8x16xf32>
    %256 = vector.extract_strided_slice %219 {offsets = [0, 32], sizes = [8, 16], strides = [1, 1]} : vector<8x128xf32> to vector<8x16xf32>
    %257 = vector.extract_strided_slice %222 {offsets = [0, 32], sizes = [8, 16], strides = [1, 1]} : vector<8x128xf32> to vector<8x16xf32>
    %cst_98 = arith.constant dense<0.000000e+00> : vector<8x8xf32>
    %258 = tpu.matmul %255, %256, %cst_98 {dimension_numbers = #tpu.dot_dimension_numbers<[1], [1], [0], [0], [0, 0, 1, 0], [], []>} : vector<8x16xf32>, vector<8x16xf32>, vector<8x8xf32> -> vector<8x8xf32>
    %cst_99 = arith.constant 0.0883883461 : f32
    %259 = vector.broadcast %cst_99 : f32 to vector<8x8xf32>
    %260 = arith.mulf %258, %259 : vector<8x8xf32>
    %cst_100 = arith.constant dense<0xFF800000> : vector<8xf32>
    %261 = vector.multi_reduction <maximumf>, %260, %cst_100 [1] : vector<8x8xf32> to vector<8xf32>
    %262 = vector.shape_cast %261 : vector<8xf32> to vector<8x1xf32>
    %263 = vector.broadcast %262 : vector<8x1xf32> to vector<8x8xf32>
    %264 = arith.subf %260, %263 : vector<8x8xf32>
    %265 = math.exp %264 : vector<8x8xf32>
    %cst_101 = arith.constant dense<0.000000e+00> : vector<8xf32>
    %266 = vector.multi_reduction <add>, %265, %cst_101 [1] : vector<8x8xf32> to vector<8xf32>
    %267 = vector.shape_cast %266 : vector<8xf32> to vector<8x1xf32>
    %268 = vector.broadcast %267 : vector<8x1xf32> to vector<8x8xf32>
    %269 = arith.divf %265, %268 : vector<8x8xf32>
    %cst_102 = arith.constant dense<0.000000e+00> : vector<8x16xf32>
    %270 = tpu.matmul %269, %257, %cst_102 {dimension_numbers = #tpu.dot_dimension_numbers<[1], [0], [0], [1], [0, 0, 1, 1], [], []>} : vector<8x8xf32>, vector<8x16xf32>, vector<8x16xf32> -> vector<8x16xf32>
    %271 = vector.extract_strided_slice %78 {offsets = [0, 48], sizes = [8, 16], strides = [1, 1]} : vector<8x128xf32> to vector<8x16xf32>
    %272 = vector.extract_strided_slice %219 {offsets = [0, 48], sizes = [8, 16], strides = [1, 1]} : vector<8x128xf32> to vector<8x16xf32>
    %273 = vector.extract_strided_slice %222 {offsets = [0, 48], sizes = [8, 16], strides = [1, 1]} : vector<8x128xf32> to vector<8x16xf32>
    %cst_103 = arith.constant dense<0.000000e+00> : vector<8x8xf32>
    %274 = tpu.matmul %271, %272, %cst_103 {dimension_numbers = #tpu.dot_dimension_numbers<[1], [1], [0], [0], [0, 0, 1, 0], [], []>} : vector<8x16xf32>, vector<8x16xf32>, vector<8x8xf32> -> vector<8x8xf32>
    %cst_104 = arith.constant 0.0883883461 : f32
    %275 = vector.broadcast %cst_104 : f32 to vector<8x8xf32>
    %276 = arith.mulf %274, %275 : vector<8x8xf32>
    %cst_105 = arith.constant dense<0xFF800000> : vector<8xf32>
    %277 = vector.multi_reduction <maximumf>, %276, %cst_105 [1] : vector<8x8xf32> to vector<8xf32>
    %278 = vector.shape_cast %277 : vector<8xf32> to vector<8x1xf32>
    %279 = vector.broadcast %278 : vector<8x1xf32> to vector<8x8xf32>
    %280 = arith.subf %276, %279 : vector<8x8xf32>
    %281 = math.exp %280 : vector<8x8xf32>
    %cst_106 = arith.constant dense<0.000000e+00> : vector<8xf32>
    %282 = vector.multi_reduction <add>, %281, %cst_106 [1] : vector<8x8xf32> to vector<8xf32>
    %283 = vector.shape_cast %282 : vector<8xf32> to vector<8x1xf32>
    %284 = vector.broadcast %283 : vector<8x1xf32> to vector<8x8xf32>
    %285 = arith.divf %281, %284 : vector<8x8xf32>
    %cst_107 = arith.constant dense<0.000000e+00> : vector<8x16xf32>
    %286 = tpu.matmul %285, %273, %cst_107 {dimension_numbers = #tpu.dot_dimension_numbers<[1], [0], [0], [1], [0, 0, 1, 1], [], []>} : vector<8x8xf32>, vector<8x16xf32>, vector<8x16xf32> -> vector<8x16xf32>
    %287 = vector.extract_strided_slice %78 {offsets = [0, 64], sizes = [8, 16], strides = [1, 1]} : vector<8x128xf32> to vector<8x16xf32>
    %288 = vector.extract_strided_slice %219 {offsets = [0, 64], sizes = [8, 16], strides = [1, 1]} : vector<8x128xf32> to vector<8x16xf32>
    %289 = vector.extract_strided_slice %222 {offsets = [0, 64], sizes = [8, 16], strides = [1, 1]} : vector<8x128xf32> to vector<8x16xf32>
    %cst_108 = arith.constant dense<0.000000e+00> : vector<8x8xf32>
    %290 = tpu.matmul %287, %288, %cst_108 {dimension_numbers = #tpu.dot_dimension_numbers<[1], [1], [0], [0], [0, 0, 1, 0], [], []>} : vector<8x16xf32>, vector<8x16xf32>, vector<8x8xf32> -> vector<8x8xf32>
    %cst_109 = arith.constant 0.0883883461 : f32
    %291 = vector.broadcast %cst_109 : f32 to vector<8x8xf32>
    %292 = arith.mulf %290, %291 : vector<8x8xf32>
    %cst_110 = arith.constant dense<0xFF800000> : vector<8xf32>
    %293 = vector.multi_reduction <maximumf>, %292, %cst_110 [1] : vector<8x8xf32> to vector<8xf32>
    %294 = vector.shape_cast %293 : vector<8xf32> to vector<8x1xf32>
    %295 = vector.broadcast %294 : vector<8x1xf32> to vector<8x8xf32>
    %296 = arith.subf %292, %295 : vector<8x8xf32>
    %297 = math.exp %296 : vector<8x8xf32>
    %cst_111 = arith.constant dense<0.000000e+00> : vector<8xf32>
    %298 = vector.multi_reduction <add>, %297, %cst_111 [1] : vector<8x8xf32> to vector<8xf32>
    %299 = vector.shape_cast %298 : vector<8xf32> to vector<8x1xf32>
    %300 = vector.broadcast %299 : vector<8x1xf32> to vector<8x8xf32>
    %301 = arith.divf %297, %300 : vector<8x8xf32>
    %cst_112 = arith.constant dense<0.000000e+00> : vector<8x16xf32>
    %302 = tpu.matmul %301, %289, %cst_112 {dimension_numbers = #tpu.dot_dimension_numbers<[1], [0], [0], [1], [0, 0, 1, 1], [], []>} : vector<8x8xf32>, vector<8x16xf32>, vector<8x16xf32> -> vector<8x16xf32>
    %303 = vector.extract_strided_slice %78 {offsets = [0, 80], sizes = [8, 16], strides = [1, 1]} : vector<8x128xf32> to vector<8x16xf32>
    %304 = vector.extract_strided_slice %219 {offsets = [0, 80], sizes = [8, 16], strides = [1, 1]} : vector<8x128xf32> to vector<8x16xf32>
    %305 = vector.extract_strided_slice %222 {offsets = [0, 80], sizes = [8, 16], strides = [1, 1]} : vector<8x128xf32> to vector<8x16xf32>
    %cst_113 = arith.constant dense<0.000000e+00> : vector<8x8xf32>
    %306 = tpu.matmul %303, %304, %cst_113 {dimension_numbers = #tpu.dot_dimension_numbers<[1], [1], [0], [0], [0, 0, 1, 0], [], []>} : vector<8x16xf32>, vector<8x16xf32>, vector<8x8xf32> -> vector<8x8xf32>
    %cst_114 = arith.constant 0.0883883461 : f32
    %307 = vector.broadcast %cst_114 : f32 to vector<8x8xf32>
    %308 = arith.mulf %306, %307 : vector<8x8xf32>
    %cst_115 = arith.constant dense<0xFF800000> : vector<8xf32>
    %309 = vector.multi_reduction <maximumf>, %308, %cst_115 [1] : vector<8x8xf32> to vector<8xf32>
    %310 = vector.shape_cast %309 : vector<8xf32> to vector<8x1xf32>
    %311 = vector.broadcast %310 : vector<8x1xf32> to vector<8x8xf32>
    %312 = arith.subf %308, %311 : vector<8x8xf32>
    %313 = math.exp %312 : vector<8x8xf32>
    %cst_116 = arith.constant dense<0.000000e+00> : vector<8xf32>
    %314 = vector.multi_reduction <add>, %313, %cst_116 [1] : vector<8x8xf32> to vector<8xf32>
    %315 = vector.shape_cast %314 : vector<8xf32> to vector<8x1xf32>
    %316 = vector.broadcast %315 : vector<8x1xf32> to vector<8x8xf32>
    %317 = arith.divf %313, %316 : vector<8x8xf32>
    %cst_117 = arith.constant dense<0.000000e+00> : vector<8x16xf32>
    %318 = tpu.matmul %317, %305, %cst_117 {dimension_numbers = #tpu.dot_dimension_numbers<[1], [0], [0], [1], [0, 0, 1, 1], [], []>} : vector<8x8xf32>, vector<8x16xf32>, vector<8x16xf32> -> vector<8x16xf32>
    %319 = vector.extract_strided_slice %78 {offsets = [0, 96], sizes = [8, 16], strides = [1, 1]} : vector<8x128xf32> to vector<8x16xf32>
    %320 = vector.extract_strided_slice %219 {offsets = [0, 96], sizes = [8, 16], strides = [1, 1]} : vector<8x128xf32> to vector<8x16xf32>
    %321 = vector.extract_strided_slice %222 {offsets = [0, 96], sizes = [8, 16], strides = [1, 1]} : vector<8x128xf32> to vector<8x16xf32>
    %cst_118 = arith.constant dense<0.000000e+00> : vector<8x8xf32>
    %322 = tpu.matmul %319, %320, %cst_118 {dimension_numbers = #tpu.dot_dimension_numbers<[1], [1], [0], [0], [0, 0, 1, 0], [], []>} : vector<8x16xf32>, vector<8x16xf32>, vector<8x8xf32> -> vector<8x8xf32>
    %cst_119 = arith.constant 0.0883883461 : f32
    %323 = vector.broadcast %cst_119 : f32 to vector<8x8xf32>
    %324 = arith.mulf %322, %323 : vector<8x8xf32>
    %cst_120 = arith.constant dense<0xFF800000> : vector<8xf32>
    %325 = vector.multi_reduction <maximumf>, %324, %cst_120 [1] : vector<8x8xf32> to vector<8xf32>
    %326 = vector.shape_cast %325 : vector<8xf32> to vector<8x1xf32>
    %327 = vector.broadcast %326 : vector<8x1xf32> to vector<8x8xf32>
    %328 = arith.subf %324, %327 : vector<8x8xf32>
    %329 = math.exp %328 : vector<8x8xf32>
    %cst_121 = arith.constant dense<0.000000e+00> : vector<8xf32>
    %330 = vector.multi_reduction <add>, %329, %cst_121 [1] : vector<8x8xf32> to vector<8xf32>
    %331 = vector.shape_cast %330 : vector<8xf32> to vector<8x1xf32>
    %332 = vector.broadcast %331 : vector<8x1xf32> to vector<8x8xf32>
    %333 = arith.divf %329, %332 : vector<8x8xf32>
    %cst_122 = arith.constant dense<0.000000e+00> : vector<8x16xf32>
    %334 = tpu.matmul %333, %321, %cst_122 {dimension_numbers = #tpu.dot_dimension_numbers<[1], [0], [0], [1], [0, 0, 1, 1], [], []>} : vector<8x8xf32>, vector<8x16xf32>, vector<8x16xf32> -> vector<8x16xf32>
    %335 = vector.extract_strided_slice %78 {offsets = [0, 112], sizes = [8, 16], strides = [1, 1]} : vector<8x128xf32> to vector<8x16xf32>
    %336 = vector.extract_strided_slice %219 {offsets = [0, 112], sizes = [8, 16], strides = [1, 1]} : vector<8x128xf32> to vector<8x16xf32>
    %337 = vector.extract_strided_slice %222 {offsets = [0, 112], sizes = [8, 16], strides = [1, 1]} : vector<8x128xf32> to vector<8x16xf32>
    %cst_123 = arith.constant dense<0.000000e+00> : vector<8x8xf32>
    %338 = tpu.matmul %335, %336, %cst_123 {dimension_numbers = #tpu.dot_dimension_numbers<[1], [1], [0], [0], [0, 0, 1, 0], [], []>} : vector<8x16xf32>, vector<8x16xf32>, vector<8x8xf32> -> vector<8x8xf32>
    %cst_124 = arith.constant 0.0883883461 : f32
    %339 = vector.broadcast %cst_124 : f32 to vector<8x8xf32>
    %340 = arith.mulf %338, %339 : vector<8x8xf32>
    %cst_125 = arith.constant dense<0xFF800000> : vector<8xf32>
    %341 = vector.multi_reduction <maximumf>, %340, %cst_125 [1] : vector<8x8xf32> to vector<8xf32>
    %342 = vector.shape_cast %341 : vector<8xf32> to vector<8x1xf32>
    %343 = vector.broadcast %342 : vector<8x1xf32> to vector<8x8xf32>
    %344 = arith.subf %340, %343 : vector<8x8xf32>
    %345 = math.exp %344 : vector<8x8xf32>
    %cst_126 = arith.constant dense<0.000000e+00> : vector<8xf32>
    %346 = vector.multi_reduction <add>, %345, %cst_126 [1] : vector<8x8xf32> to vector<8xf32>
    %347 = vector.shape_cast %346 : vector<8xf32> to vector<8x1xf32>
    %348 = vector.broadcast %347 : vector<8x1xf32> to vector<8x8xf32>
    %349 = arith.divf %345, %348 : vector<8x8xf32>
    %cst_127 = arith.constant dense<0.000000e+00> : vector<8x16xf32>
    %350 = tpu.matmul %349, %337, %cst_127 {dimension_numbers = #tpu.dot_dimension_numbers<[1], [0], [0], [1], [0, 0, 1, 1], [], []>} : vector<8x8xf32>, vector<8x16xf32>, vector<8x16xf32> -> vector<8x16xf32>
    %351 = tpu.concatenate %238, %254, %270, %286, %302, %318, %334, %350 in 1 : vector<8x16xf32>, vector<8x16xf32>, vector<8x16xf32>, vector<8x16xf32>, vector<8x16xf32>, vector<8x16xf32>, vector<8x16xf32>, vector<8x16xf32> -> vector<8x128xf32>
    %cst_128 = arith.constant dense<0.000000e+00> : vector<8x128xf32>
    %352 = tpu.matmul %351, %71, %cst_128 {dimension_numbers = #tpu.dot_dimension_numbers<[1], [0], [0], [1], [0, 0, 1, 1], [], []>} : vector<8x128xf32>, vector<128x128xf32>, vector<8x128xf32> -> vector<8x128xf32>
    %353 = vector.broadcast %75 : vector<1x128xf32> to vector<8x128xf32>
    %354 = arith.addf %352, %353 : vector<8x128xf32>
    %355 = arith.addf %216, %354 : vector<8x128xf32>
    %c0_129 = arith.constant 0 : index
    %c0_130 = arith.constant 0 : index
    %c0_131 = arith.constant 0 : index
    %356 = vector.load %arg14[%c0_129, %c0_130, %c0_131] : memref<1x8x128xf32, #tpu.memory_space<vmem>>, vector<1x8x128xf32>
    %357 = vector.shape_cast %356 : vector<1x8x128xf32> to vector<8x128xf32>
    %358 = vector.shape_cast %355 : vector<8x128xf32> to vector<1x8x128xf32>
    tpu.vector_store %arg14[%c0_129, %c0_130, %c0_131], %358 {strides = array<i32>} : memref<1x8x128xf32, #tpu.memory_space<vmem>>, vector<1x8x128xf32>,
    return
  }
  func.func @transform_0(%arg0: i32) -> (i32, i32, i32) {
    %c0_i32 = arith.constant 0 : i32
    %c0_i32_0 = arith.constant 0 : i32
    %c0_i32_1 = arith.constant 0 : i32
    return %arg0, %c0_i32, %c0_i32_0 : i32, i32, i32
  }
  func.func @transform_1(%arg0: i32) -> (i32, i32, i32) {
    %c1_i32 = arith.constant 1 : i32
    %c0_i32 = arith.constant 0 : i32
    %c0_i32_0 = arith.constant 0 : i32
    return %arg0, %c1_i32, %c0_i32 : i32, i32, i32
  }
  func.func @transform_2(%arg0: i32) -> (i32, i32, i32) {
    %c2_i32 = arith.constant 2 : i32
    %c0_i32 = arith.constant 0 : i32
    %c0_i32_0 = arith.constant 0 : i32
    return %arg0, %c2_i32, %c0_i32 : i32, i32, i32
  }
  func.func @transform_3(%arg0: i32) -> (i32, i32) {
    %c0_i32 = arith.constant 0 : i32
    %c0_i32_0 = arith.constant 0 : i32
    %c0_i32_1 = arith.constant 0 : i32
    return %c0_i32, %c0_i32_0 : i32, i32
  }
  func.func @transform_4(%arg0: i32) -> (i32, i32) {
    %c0_i32 = arith.constant 0 : i32
    %c0_i32_0 = arith.constant 0 : i32
    %c0_i32_1 = arith.constant 0 : i32
    return %c0_i32, %c0_i32_0 : i32, i32
  }
  func.func @transform_5(%arg0: i32) -> (i32, i32) {
    %c0_i32 = arith.constant 0 : i32
    %c0_i32_0 = arith.constant 0 : i32
    %c0_i32_1 = arith.constant 0 : i32
    return %c0_i32, %c0_i32_0 : i32, i32
  }
  func.func @transform_6(%arg0: i32) -> (i32, i32) {
    %c0_i32 = arith.constant 0 : i32
    %c0_i32_0 = arith.constant 0 : i32
    %c0_i32_1 = arith.constant 0 : i32
    return %c0_i32, %c0_i32_0 : i32, i32
  }
  func.func @transform_7(%arg0: i32) -> (i32, i32) {
    %c0_i32 = arith.constant 0 : i32
    %c0_i32_0 = arith.constant 0 : i32
    %c0_i32_1 = arith.constant 0 : i32
    return %c0_i32, %c0_i32_0 : i32, i32
  }
  func.func @transform_8(%arg0: i32) -> (i32, i32) {
    %c0_i32 = arith.constant 0 : i32
    %c0_i32_0 = arith.constant 0 : i32
    %c0_i32_1 = arith.constant 0 : i32
    return %c0_i32, %c0_i32_0 : i32, i32
  }
  func.func @transform_9(%arg0: i32) -> (i32, i32) {
    %c0_i32 = arith.constant 0 : i32
    %c0_i32_0 = arith.constant 0 : i32
    %c0_i32_1 = arith.constant 0 : i32
    return %c0_i32, %c0_i32_0 : i32, i32
  }
  func.func @transform_10(%arg0: i32) -> (i32, i32) {
    %c0_i32 = arith.constant 0 : i32
    %c0_i32_0 = arith.constant 0 : i32
    %c0_i32_1 = arith.constant 0 : i32
    return %c0_i32, %c0_i32_0 : i32, i32
  }
  func.func @transform_11(%arg0: i32) -> (i32, i32) {
    %c0_i32 = arith.constant 0 : i32
    %c0_i32_0 = arith.constant 0 : i32
    %c0_i32_1 = arith.constant 0 : i32
    return %c0_i32, %c0_i32_0 : i32, i32
  }
  func.func @transform_12(%arg0: i32) -> (i32, i32) {
    %c0_i32 = arith.constant 0 : i32
    %c0_i32_0 = arith.constant 0 : i32
    %c0_i32_1 = arith.constant 0 : i32
    return %c0_i32, %c0_i32_0 : i32, i32
  }
  func.func @transform_13(%arg0: i32) -> (i32, i32, i32) {
    %c0_i32 = arith.constant 0 : i32
    %c0_i32_0 = arith.constant 0 : i32
    %c0_i32_1 = arith.constant 0 : i32
    return %arg0, %c0_i32, %c0_i32_0 : i32, i32, i32
  }
}

</mosaic_0001>

<bundles_post_ra>
// kernel: tpu_custom_call.1
= control target key start
LH: loop header
LB: loop body
LE: loop exit
PB: predicated region body
PF: predicated region fallthrough
CT: control target
= control target key end

     0   :  { %s6413_s0 = inlined_call_operand.hbm [shape: f32[2,24,128], index: 0, kind: input, shape index: {}]   ;;  %s6414_s1 = inlined_call_operand.hbm [shape: f32[2,24,128], index: 1, kind: input, shape index: {}]   ;;  %s6415_s2 = inlined_call_operand.hbm [shape: f32[2,24,128], index: 2, kind: input, shape index: {}]   ;;  %s6416_s3 = inlined_call_operand.vmem [shape: f32[1,128], index: 3, kind: input, shape index: {}]   ;;  %s6417_s4 = inlined_call_operand.vmem [shape: f32[1,128], index: 4, kind: input, shape index: {}]   ;;  %s6418_s5 = inlined_call_operand.hbm [shape: f32[128,128], index: 5, kind: input, shape index: {}]   ;;  %s6419_s6 = inlined_call_operand.vmem [shape: f32[1,128], index: 6, kind: input, shape index: {}]   ;;  %s6420_s7 = inlined_call_operand.hbm [shape: f32[128,128], index: 7, kind: input, shape index: {}]   ;;  %s6421_s8 = inlined_call_operand.vmem [shape: f32[1,128], index: 8, kind: input, shape index: {}]   ;;  %s6422_s9 = inlined_call_operand.hbm [shape: f32[128,128], index: 9, kind: input, shape index: {}]   ;;  %s6423_s10 = inlined_call_operand.vmem [shape: f32[1,128], index: 10, kind: input, shape index: {}]   ;;  %s6424_s11 = inlined_call_operand.hbm [shape: f32[128,128], index: 11, kind: input, shape index: {}]   ;;  %s6425_s12 = inlined_call_operand.vmem [shape: f32[1,128], index: 12, kind: input, shape index: {}]   ;;  %s6426_s13 = inlined_call_operand.hbm [shape: f32[2,8,128], index: 13, kind: output, shape index: {}]  }
   0x1   :  { %6452 = sst [smem:[#allocation26_spill]] %s6414_s1 }
   0x2   :  { %6453 = sst [smem:[#allocation27_spill]] %s6418_s5 }
   0x3   :  { %6454 = sst [smem:[#allocation28_spill]] %s6419_s6 }
   0x4   :  { %6455 = sst [smem:[#allocation29_spill]] %s6421_s8 }
   0x5   :  { %6456 = sst [smem:[#allocation30_spill]] %s6422_s9 }
   0x6   :  { %6457 = sst [smem:[#allocation31_spill]] %s6423_s10 }
   0x7   :  { %6458 = sst [smem:[#allocation32_spill]] %s6425_s12 }
   0x8   :  { %6459 = sst [smem:[#allocation33_spill]] %s6426_s13 }
   0x9   :  { %18 = vsyncpa [#allocation3], 0 }
   0xa   :  { %20 = vsyncpa [#allocation3 + $0x1], 0 }
   0xb   :  { %21 = vsyncpa [#allocation6], 0 }
   0xc   :  { %23 = vsyncpa [#allocation6 + $0x1], 0 }
   0xd   :  { %24 = vsyncpa [#allocation9], 0 }
   0xe   :  { %25 = vsyncpa [#allocation12], 0 }
   0xf   :  { %26 = vsyncpa [#allocation4], 0 }
  0x10   :  { %28 = vsyncpa [#allocation4 + $0x1], 0  ;;  %s5489_s25 = smov 0   ;;  %s5491_s26 = smov 0  }
  0x11   :  { %s5493_s27 = smov 0   ;;  %s5495_s28 = smov 0  }
  0x12 LB: > { %6460 = sst [smem:[#allocation20_spill]] %s5385_s25  ;;  %s5399_s29 = smov [#allocation8]   ;;  %s5397_s28 = sphi %s5495_s28, %s6503_s28   ;;  %s5393_s27 = sphi %s5493_s27, %s6507_s27   ;;  %s5389_s26 = sphi %s5491_s26, %s6506_s26   ;;  %s5385_s25 = sphi %s5489_s25, %s6505_s25  }
  0x13   : > { %6461 = sst [smem:[#allocation21_spill]] %s5397_s28  ;;  %s371_s30 = sshll.u32 %s5399_s29, 4  ;;  %s5515_s30 = int_to_ptr.vmem [resolvable:$true] %s371_s30 }
  0x14   : > { %s5510_s14 = sadd.s32 4294967295, %s5397_s28   ;;  %p4096_p0 = scmp.ge.s32.totalorder %s5397_s28, 1 }
  0x15   : > { %p6439_p1 = scmp.eq.s32.totalorder %s5510_s14, 0  ;;  %p353_p2 = scmp.lt.s32.totalorder %s5397_s28, 3 }
  0x16   : > { %s5400_s16 = smov [#allocation11]   ;;  %s6464_s5 = sld [smem:[#allocation27_spill]] }
  0x17   : > { %p5517_p3 = pnand %p4096_p0, %p353_p2  ;;  %s403_s17 = sshll.u32 %s5400_s16, 4  ;;  %s5530_s17 = int_to_ptr.vmem [resolvable:$true] %s403_s17 }
  0x19   : > { %s6462_s15 = scalar_select %p5517_p3, 1, 0 }
  0x1a   : > { %p4960_p5 = pneg %p5517_p3 }
  0x1c   : > { %p5526_p6 = pnand %p4960_p5, %p6439_p1  ;;  %s5115_s21 = scalar_lea.hbm %s6464_s5, 2048 }
  0x1d   : > { %p5116_p7 = scmp.ne.s32.totalorder %s6464_s5, %s5115_s21  ;;  %p5122_p11 = scmp.lt.u32.totalorder %s5115_s21, %s6464_s5 }
  0x1e   : > { %s6463_s18 = scalar_select %p5526_p6, 1, 0 }
  0x1f   : > { %p5540_p8 = pneg %p5526_p6 }
  0x21   : > { %s6465_s24 = scalar_select %p5540_p8, 1, 0 }
  0x22   : > { %p5118_p9 = pnand %p5540_p8, %p5116_p7 }
  0x24   : > { %p5119_p10 = pneg %p5118_p9 }
  0x26   : > { %p5124_p12 = pnand %p5122_p11, %p5119_p10 }
  0x28   : > { %5127 = shalt.err (!%p5124_p12)
}
  0x29   : > { %s5128_s19 = scalar_lea.vmem %s5515_s30, 2048  ;;  %p5136_p5 = scmp.lt.s32.totalorder %s5515_s30, %s5515_s30 }
  0x2a   : > { %p5129_p13 = scmp.ne.s32.totalorder %s5515_s30, %s5128_s19  ;;  %p5137_p4 = scmp.lt.s32.totalorder %s5128_s19, %s5128_s19 }
  0x2c   : > { %p5131_p0 = pnand %p5129_p13, %p5540_p8  ;;  %p5138_p7 = por %p5137_p4, %p5136_p5 }
  0x2e   : > { %p5132_p2 = pneg %p5131_p0 }
  0x30   : > { %p5139_p9 = pnand %p5138_p7, %p5132_p2 }
  0x32   : > { %5142 = shalt.err (!%p5139_p9)
}
  0x33   : > { %s6429_s20 = smov 128   ;;  %s6431_s21 = smov 8  }
  0x34   : > { %4963 = dma.hbm_to_vmem [thread:$0]  (!%p5526_p6), %s6464_s5, 2048, %s5515_s30, [#allocation9], %s6429_s20, %s6429_s20, %s6431_s21  }
  0x35   : > { %s6466_s9 = sld [smem:[#allocation30_spill]] }
  0x3b   : > { %s5143_s19 = scalar_lea.hbm %s6466_s9, 2048 }
  0x3c   : > { %p5144_p4 = scmp.ne.s32.totalorder %s6466_s9, %s5143_s19  ;;  %p5150_p12 = scmp.lt.u32.totalorder %s5143_s19, %s6466_s9 }
  0x3e   : > { %p5146_p10 = pnand %p5144_p4, %p5540_p8 }
  0x40   : > { %p5147_p11 = pneg %p5146_p10 }
  0x42   : > { %p5152_p13 = pnand %p5150_p12, %p5147_p11 }
  0x44   : > { %5155 = shalt.err (!%p5152_p13)
}
  0x45   : > { %s5156_s30 = scalar_lea.vmem %s5530_s17, 2048  ;;  %p5164_p7 = scmp.lt.s32.totalorder %s5530_s17, %s5530_s17 }
  0x46   : > { %p5157_p0 = scmp.ne.s32.totalorder %s5530_s17, %s5156_s30  ;;  %p5165_p9 = scmp.lt.s32.totalorder %s5156_s30, %s5156_s30 }
  0x48   : > { %p5159_p2 = pnand %p5157_p0, %p5540_p8  ;;  %p5166_p4 = por %p5165_p9, %p5164_p7 }
  0x4a   : > { %p5160_p5 = pneg %p5159_p2 }
  0x4c   : > { %p5167_p10 = pnand %p5166_p4, %p5160_p5 }
  0x4e   : > { %5170 = shalt.err (!%p5167_p10)
}
  0x4f   : > { %4969 = dma.hbm_to_vmem [thread:$0]  (!%p5526_p6), %s6466_s9, 2048, %s5530_s17, [#allocation12], %s6429_s20, %s6429_s20, %s6431_s21  }
  0x50   : > { %s4095_s12 = sadd.s32 4294967294, %s5397_s28   ;;  %s5592_s13 = sadd.s32 1, %s5397_s28  }
  0x51   : > { %6467 = sst [smem:[#allocation22_spill]] %s5592_s13  ;;  %s38_s22 = ssub.s32 %s5397_s28, %s5592_s13 }
  0x52   : > { %s41_s23 = sadd.s32 1, %s5393_s27  ;;  %p39_p11 = scmp.eq.s32.totalorder %s38_s22, 0 }
  0x53   : > { %p48_p12 = scmp.ne.s32.totalorder %s5393_s27, %s5389_s26  ;;  %p49_p13 = scmp.eq.s32.totalorder %s5397_s28, 0 }
  0x54   : > { %p54_p0 = scmp.ne.s32.totalorder %s5389_s26, %s5385_s25  ;;  %p340_p7 = scmp.eq.s32.totalorder %s5510_s14, 1 }
  0x55   : > { %s5603_s29 = scalar_select %p39_p11, %s5393_s27, %s41_s23  }
  0x56   : > { %p50_p2 = por %p49_p13, %p48_p12  ;;  %p5607_p5 = por %p6439_p1, %p54_p0 }
  0x57   : > { %6468 = sst [smem:[#allocation23_spill]] %s5603_s29  ;;  %p346_p9 = scmp.eq.s32.totalorder %s4095_s12, 1 }
  0x58   : > { %s6469_s16 = scalar_select %p5607_p5, 1, 0 }
  0x59   : > { %p4991_p4 = scmp.lt.s32.totalorder %s5397_s28, 2  ;;  %s6433_s17 = sand.u32 1, %s5393_s27  }
  0x5a   : > { %p5614_p10 = por %p340_p7, %p48_p12  ;;  %p5618_p3 = por %p346_p9, %p54_p0 }
  0x5b   : > { %s5624_s6 = sshll.u32 %s6433_s17, 3  ;;  %s5627_s10 = smul.u32 384, %s5397_s28 }
  0x5c   : > { %s6470_s19 = scalar_select %p5614_p10, 1, 0 }
  0x5d   : > { %s6472_s30 = scalar_select %p5618_p3, 1, 0 }
  0x5e   : > { %6471 = sst [smem:[#allocation24_spill]] %s6470_s19  ;;  %p5629_p11 = pnand %p4991_p4, %p50_p2 }
  0x5f   : > { %6473 = sst [smem:[#allocation25_spill]] %s6472_s30  ;;  %s455_s12 = sand.u32 1, %s5397_s28  }
  0x60   : > { %s6474_s22 = scalar_select %p5629_p11, 1, 0 }
  0x61   : > { %s6475_s1 = sld [smem:[#allocation26_spill]]  ;;  %s459_s17 = scalar_lea.vmem [#allocation5], %s5624_s6 }
  0x62   : > { %s468_s9 = sshll.u32 %s459_s17, 4  ;;  %s5643_s29 = scalar_lea.sflag [#allocation6], %s455_s12  ;;  %s5641_s9 = int_to_ptr.vmem [resolvable:$true] %s468_s9 }
  0x63   : > { %p5648_p13 = pneg %p5629_p11 }
  0x65   : > { %s6476_s28 = scalar_select %p5648_p13, 1, 0 }
  0x67   : > { %s3979_s21 = scalar_lea.hbm %s6475_s1, %s5627_s10  ;;  %s5176_s30 = scalar_lea.hbm %s6475_s1, 768 }
  0x68   : > { %s5638_s5 = scalar_lea.hbm %s3979_s21, 128  ;;  %s5201_s13 = scalar_lea.hbm %s3979_s21, 256 }
  0x69   : > { %p5172_p12 = scmp.ne.s32.totalorder %s5638_s5, %s5201_s13  ;;  %p5177_p7 = scmp.lt.u32.totalorder %s5638_s5, %s6475_s1 }
  0x6a   : > { %p5178_p9 = scmp.lt.u32.totalorder %s5176_s30, %s5201_s13  ;;  %p5180_p1 = scmp.lt.u32.totalorder %s5201_s13, %s5638_s5 }
  0x6b   : > { %p5174_p0 = pnand %p5648_p13, %p5172_p12 }
  0x6c   : > { %p5179_p4 = por %p5178_p9, %p5177_p7 }
  0x6d   : > { %p5175_p2 = pneg %p5174_p0 }
  0x6e   : > { %p5181_p3 = por %p5180_p1, %p5179_p4 }
  0x70   : > { %p5182_p10 = pnand %p5181_p3, %p5175_p2 }
  0x72   : > { %5185 = shalt.err (!%p5182_p10)
}
  0x73   : > { %s5186_s21 = scalar_lea.vmem %s5641_s9, 128  ;;  %s5403_s12 = smov [#allocation5]  }
  0x74   : > { %p5187_p12 = scmp.ne.s32.totalorder %s5641_s9, %s5186_s21  ;;  %s5191_s20 = sshll.u32 %s5403_s12, 4  ;;  %s5192_s20 = int_to_ptr.vmem [resolvable:$false] %s5191_s20 }
  0x75   : > { %s5193_s25 = scalar_lea.vmem %s5192_s20, 256  ;;  %p5194_p6 = scmp.lt.s32.totalorder %s5641_s9, %s5192_s20 }
  0x76   : > { %p5189_p0 = pnand %p5187_p12, %p5648_p13  ;;  %p5195_p8 = scmp.lt.s32.totalorder %s5193_s25, %s5186_s21 }
  0x78   : > { %p5190_p5 = pneg %p5189_p0  ;;  %p5196_p7 = por %p5195_p8, %p5194_p6 }
  0x7a   : > { %p5197_p9 = pnand %p5196_p7, %p5190_p5 }
  0x7c   : > { %5200 = shalt.err (!%p5197_p9)
}
  0x7d   : > { %4979 = dma.hbm_to_vmem [thread:$0]  (!%p5629_p11), %s5638_s5, 128, %s5641_s9, %s5643_s29  }
  0x7e   : > { %s5404_s13 = smov [#allocation10]   ;;  %s5405_s23 = smov [#allocation13]  }
  0x7f   : > { %s387_s30 = sshll.u32 %s5404_s13, 4  ;;  %s419_s17 = sshll.u32 %s5405_s23, 4  ;;  %s388_s30 = int_to_ptr.vmem [resolvable:$true] %s387_s30  ;;  %s420_s17 = int_to_ptr.vmem [resolvable:$true] %s419_s17 }
  0x80   : > { %s5202_s20 = scalar_lea.hbm %s6420_s7, 2048  ;;  %p6477_p3 = scmp.ne.s32.totalorder %s6465_s24, 0 }
  0x81   : > { %p5203_p1 = scmp.ne.s32.totalorder %s6420_s7, %s5202_s20  ;;  %p5209_p5 = scmp.lt.u32.totalorder %s5202_s20, %s6420_s7 }
  0x83   : > { %p5205_p6 = pnand %p5203_p1, %p6477_p3 }
  0x85   : > { %p5206_p8 = pneg %p5205_p6 }
  0x87   : > { %p5211_p10 = pnand %p5209_p5, %p5206_p8 }
  0x89   : > { %5214 = shalt.err (!%p5211_p10)
}
  0x8a   : > { %s5215_s5 = scalar_lea.vmem %s388_s30, 2048  ;;  %p5223_p0 = scmp.lt.s32.totalorder %s388_s30, %s388_s30 }
  0x8b   : > { %p5216_p2 = scmp.ne.s32.totalorder %s388_s30, %s5215_s5  ;;  %p5224_p7 = scmp.lt.s32.totalorder %s5215_s5, %s5215_s5 }
  0x8d   : > { %p5218_p4 = pnand %p5216_p2, %p6477_p3  ;;  %p5225_p9 = por %p5224_p7, %p5223_p0 }
  0x8f   : > { %p5219_p12 = pneg %p5218_p4 }
  0x91   : > { %p5226_p11 = pnand %p5225_p9, %p5219_p12 }
  0x93   : > { %5229 = shalt.err (!%p5226_p11)
}
  0x94   : > { %p6478_p1 = scmp.ne.s32.totalorder %s6463_s18, 0  ;;  %s6479_s1 = smov 8  }
  0x95   : > { %s6480_s9 = smov 128   ;;  %s5230_s12 = scalar_lea.hbm %s6424_s11, 2048 }
  0x96   : > { %4966 = dma.hbm_to_vmem [thread:$0]  (!%p6478_p1), %s6420_s7, 2048, %s388_s30, [#allocation9], %s6480_s9, %s6480_s9, %s6479_s1  }
  0x97   : > { %p5231_p6 = scmp.ne.s32.totalorder %s6424_s11, %s5230_s12  ;;  %p5237_p5 = scmp.lt.u32.totalorder %s5230_s12, %s6424_s11 }
  0x99   : > { %p5233_p11 = pnand %p5231_p6, %p6477_p3 }
  0x9b   : > { %p5234_p8 = pneg %p5233_p11 }
  0x9d   : > { %p5239_p10 = pnand %p5237_p5, %p5234_p8 }
  0x9f   : > { %5242 = shalt.err (!%p5239_p10)
}
  0xa0   : > { %s5243_s8 = scalar_lea.vmem %s420_s17, 2048  ;;  %p5251_p0 = scmp.lt.s32.totalorder %s420_s17, %s420_s17 }
  0xa1   : > { %p5244_p2 = scmp.ne.s32.totalorder %s420_s17, %s5243_s8  ;;  %p5252_p7 = scmp.lt.s32.totalorder %s5243_s8, %s5243_s8 }
  0xa3   : > { %p5246_p4 = pnand %p5244_p2, %p6477_p3  ;;  %p5253_p9 = por %p5252_p7, %p5251_p0 }
  0xa5   : > { %p5247_p12 = pneg %p5246_p4 }
  0xa7   : > { %p5254_p13 = pnand %p5253_p9, %p5247_p12 }
  0xa9   : > { %5257 = shalt.err (!%p5254_p13)
}
  0xaa   : > { %4972 = dma.hbm_to_vmem [thread:$0]  (!%p6478_p1), %s6424_s11, 2048, %s420_s17, [#allocation12], %s6480_s9, %s6480_s9, %s6479_s1  }
  0xab   : > { %s5718_s23 = scalar_lea.hbm %s6413_s0, %s5627_s10  ;;  %s440_s18 = scalar_lea.vmem [#allocation2], %s5624_s6 }
  0xac   : > { %s448_s12 = sshll.u32 %s440_s18, 4  ;;  %s5727_s25 = scalar_lea.hbm %s6415_s2, %s5627_s10  ;;  %s5721_s12 = int_to_ptr.vmem [resolvable:$true] %s448_s12 }
  0xad   : > { %s6481_s5 = sand.u32 1, %s5393_s27   ;;  %s5258_s1 = scalar_lea.hbm %s5718_s23, 128 }
  0xae   : > { %s437_s17 = scalar_lea.sflag [#allocation3], %s6481_s5  ;;  %p5259_p13 = scmp.ne.s32.totalorder %s5718_s23, %s5258_s1 }
  0xaf   : > { %p6482_p3 = scmp.ne.s32.totalorder %s6476_s28, 0  ;;  %s5263_s30 = scalar_lea.hbm %s6413_s0, 768 }
  0xb0   : > { %p5264_p11 = scmp.lt.u32.totalorder %s5718_s23, %s6413_s0  ;;  %p5265_p8 = scmp.lt.u32.totalorder %s5263_s30, %s5258_s1 }
  0xb1   : > { %p5261_p1 = pnand %p5259_p13, %p6482_p3  ;;  %p5267_p10 = scmp.lt.u32.totalorder %s5258_s1, %s5718_s23 }
  0xb2   : > { %p5266_p5 = por %p5265_p8, %p5264_p11 }
  0xb3   : > { %p5262_p6 = pneg %p5261_p1 }
  0xb4   : > { %p5268_p2 = por %p5267_p10, %p5266_p5 }
  0xb6   : > { %p5269_p4 = pnand %p5268_p2, %p5262_p6 }
  0xb8   : > { %5272 = shalt.err (!%p5269_p4)
}
  0xb9   : > { %s5273_s10 = scalar_lea.vmem %s5721_s12, 128  ;;  %s5406_s13 = smov [#allocation2]  }
  0xba   : > { %p5274_p12 = scmp.ne.s32.totalorder %s5721_s12, %s5273_s10  ;;  %s5278_s18 = sshll.u32 %s5406_s13, 4  ;;  %s5279_s18 = int_to_ptr.vmem [resolvable:$false] %s5278_s18 }
  0xbb   : > { %s5280_s20 = scalar_lea.vmem %s5279_s18, 256  ;;  %p5281_p9 = scmp.lt.s32.totalorder %s5721_s12, %s5279_s18 }
  0xbc   : > { %p5276_p0 = pnand %p5274_p12, %p6482_p3  ;;  %p5282_p13 = scmp.lt.s32.totalorder %s5280_s20, %s5273_s10 }
  0xbe   : > { %p5277_p7 = pneg %p5276_p0  ;;  %p5283_p1 = por %p5282_p13, %p5281_p9 }
  0xc0   : > { %p5284_p11 = pnand %p5283_p1, %p5277_p7 }
  0xc2   : > { %5287 = shalt.err (!%p5284_p11)
}
  0xc3   : > { %p6483_p6 = scmp.ne.s32.totalorder %s6474_s22, 0  ;;  %s5753_s21 = scalar_lea.hbm %s5727_s25, 256 }
  0xc4   : > { %s479_s5 = scalar_lea.vmem [#allocation7], %s5624_s6  ;;  %s5318_s9 = scalar_lea.hbm %s5727_s25, 384 }
  0xc5   : > { %4976 = dma.hbm_to_vmem [thread:$0]  (!%p6483_p6), %s5718_s23, 128, %s5721_s12, %s437_s17  }
  0xc6   : > { %s488_s1 = sshll.u32 %s479_s5, 4  ;;  %p5289_p8 = scmp.ne.s32.totalorder %s5753_s21, %s5318_s9  ;;  %s489_s1 = int_to_ptr.vmem [resolvable:$true] %s488_s1 }
  0xc7   : > { %s5293_s19 = scalar_lea.hbm %s6415_s2, 768  ;;  %p5294_p2 = scmp.lt.u32.totalorder %s5753_s21, %s6415_s2 }
  0xc8   : > { %p5291_p5 = pnand %p5289_p8, %p6482_p3  ;;  %p5295_p4 = scmp.lt.u32.totalorder %s5293_s19, %s5318_s9 }
  0xc9   : > { %p5297_p0 = scmp.lt.u32.totalorder %s5318_s9, %s5753_s21 }
  0xca   : > { %p5292_p10 = pneg %p5291_p5  ;;  %p5296_p12 = por %p5295_p4, %p5294_p2 }
  0xcc   : > { %p5298_p7 = por %p5297_p0, %p5296_p12 }
  0xce   : > { %p5299_p9 = pnand %p5298_p7, %p5292_p10 }
  0xd0   : > { %5302 = shalt.err (!%p5299_p9)
}
  0xd1   : > { %s5303_s6 = scalar_lea.vmem %s489_s1, 128  ;;  %s5407_s23 = smov [#allocation7]  }
  0xd2   : > { %p5304_p13 = scmp.ne.s32.totalorder %s489_s1, %s5303_s6  ;;  %s5308_s12 = sshll.u32 %s5407_s23, 4  ;;  %s5309_s12 = int_to_ptr.vmem [resolvable:$false] %s5308_s12 }
  0xd3   : > { %s5310_s25 = scalar_lea.vmem %s5309_s12, 256  ;;  %p5311_p8 = scmp.lt.s32.totalorder %s489_s1, %s5309_s12 }
  0xd4   : > { %p5306_p1 = pnand %p5304_p13, %p6482_p3  ;;  %p5312_p5 = scmp.lt.s32.totalorder %s5310_s25, %s5303_s6 }
  0xd6   : > { %p5307_p11 = pneg %p5306_p1  ;;  %p5313_p6 = por %p5312_p5, %p5311_p8 }
  0xd8   : > { %p5314_p2 = pnand %p5313_p6, %p5307_p11 }
  0xda   : > { %5317 = shalt.err (!%p5314_p2)
}
  0xdb   : > { %p6484_p4 = scmp.ne.s32.totalorder %s6474_s22, 0  ;;  %p6485_p10 = scmp.ne.s32.totalorder %s6462_s15, 0 }
  0xdc   : > { %s5777_s28 = sand.u32 (!%p6485_p10), 1, %s5389_s26   ;;  %p6486_p3 = scmp.ne.s32.totalorder (!%p6485_p10), %s6469_s16, 0 }
  0xdd   : > { %4982 = dma.hbm_to_vmem [thread:$0]  (!%p6484_p4), %s5753_s21, 128, %s489_s1, %s5643_s29  }
  0xde   : > { %497 = sbr.rel (%p6485_p10) target bundleno = 7974 (0x1f26), region = 72  ;;  %s5780_s17 = sshll.u32 (!%p6485_p10), %s5777_s28, 3 }
  0xdf   : > { %s500_s13 = scalar_lea.sflag (!%p6485_p10), [#allocation3], %s5777_s28  ;;  %s503_s18 = scalar_lea.vmem (!%p6485_p10), [#allocation2], %s5780_s17 }
  0xe5   : > { %5364 = dma.done.wait (%p6486_p3), %s500_s13, 128  }
  0xe6   : > { %5366 = vsyncadd (%p6486_p3), %s500_s13, 4294967168  ;;  %s508_s15 = sand.u32 1, %s5510_s14   ;;  %s512_s22 = scalar_lea.vmem [#allocation5], %s5780_s17 }
  0xe7   : > { %s509_s29 = scalar_lea.sflag [#allocation6], %s508_s15 }
  0xe8   : > { %5368 = dma.done.wait (%p6486_p3), %s509_s29, 256  }
  0xe9   : > { %5370 = vsyncadd (%p6486_p3), %s509_s29, 4294967040  ;;  %s521_s20 = scalar_lea.vmem [#allocation7], %s5780_s17  ;;  %p6487_p6 = scmp.eq.s32.totalorder %s5510_s14, 0 }
  0xeb   : > { %5372 = dma.done.wait (%p6487_p6), [#allocation9], 4096   ;;  %p6488_p12 = pmov %p6487_p6 }
  0xec   : > { %p6489_p0 = pmov %p6487_p6 }
  0xed   : > { %5374 = vsyncadd (%p6488_p12), [#allocation9], 4294963200 }
  0xee   : > { %5376 = dma.done.wait (%p6489_p0), [#allocation12], 4096   ;;  %p6490_p7 = pmov %p6489_p0 }
  0xef   : > { %v591_v0 = vld [vmem:[%s512_s22] sm:$0xff]  ;;  %v590_v1 = vld [vmem:[%s503_s18] sm:$0xff]  ;;  %v5408_v5 = vmov 0.0|0.0   ;;  %vm5409_vm0 = vmmov 0   ;;  %v5410_v49 = vmov 0.0   ;;  %s6491_s30 = sld [smem:[#allocation29_spill]] }
  0xf0   : > { %5378 = vsyncadd (%p6490_p7), [#allocation12], 4294963200  ;;  %621 = vadd.xlane.f32.xlu0 %v591_v0  ;;  %v663_v2 = vld [vmem:[#allocation10] sm:$0xff]  ;;  %v664_v3 = vld [vmem:[#allocation10 + $0x8] sm:$0xff]  ;;  %4787 = vmatprep.subr.bf16.mxu1 %v5408_v5  ;;  %vm943_vm1 = vcmask 130048   ;;  %s6492_s10 = sld [smem:[#allocation28_spill]] }
  0xf1   : > { %v647_v4 = vld [vmem:[#allocation8] sm:$0xff]  ;;  %v5804_v6 = vpack.c.bf16 %v664_v3, %v663_v2  ;;  %4763 = vmatprep.subr.bf16.mxu0 %v5408_v5  ;;  %v648_v7 = vld [vmem:[#allocation8 + $0x8] sm:$0xff]  ;;  %v665_v8 = vld [vmem:[#allocation10 + $0x10] sm:$0xff]  ;;  %4425 = vmatprep.mubr.msk.f32.mxu1 %vm5409_vm0, %v5410_v49  ;;  %s6493_s12 = sld [smem:[#allocation31_spill]]  ;;  %vm1021_vm2 = vcmask 64512   ;;  %s5411_s25 = smov 112  }
  0xf2   : > { %v666_v9 = vld [vmem:[#allocation10 + $0x18] sm:$0xff]  ;;  %v4764_v10 = vpack.c.bf16 %v648_v7, %v647_v4  ;;  %v649_v11 = vld [vmem:[#allocation8 + $0x10] sm:$0xff]  ;;  %v667_v15 = vld [vmem:[#allocation10 + $0x20] sm:$0xff]  ;;  %4390 = vmatprep.mubr.msk.f32.mxu0 %vm5409_vm0, %v5410_v49  ;;  %s5412_s13 = smov 96   ;;  %s5413_s18 = smov 80   ;;  %vm2298_vm3 = vcmask 261120  }
  0xf3   : > { %v650_v12 = vld [vmem:[#allocation8 + $0x18] sm:$0xff]  ;;  %4789 = vmatpush3.bf16.msra.mxu1 %v5804_v6  ;;  %v5808_v13 = vpack.c.bf16 %v666_v9, %v665_v8  ;;  %v668_v16 = vld [vmem:[#allocation10 + $0x28] sm:$0xff]  ;;  %v651_v26 = vld [vmem:[#allocation8 + $0x20] sm:$0xff]  ;;  %s5414_s15 = smov 64   ;;  %s5415_s29 = smov 48   ;;  %vm2300_vm4 = vcmask 392192  }
  0xf4   : > { %595 = vadd.xlane.f32.xlu0 %v590_v1  ;;  %4765 = vmatpush3.bf16.msra.mxu0 %v4764_v10  ;;  %v4767_v14 = vpack.c.bf16 %v650_v12, %v649_v11  ;;  %v5813_v17 = vpack.c.bf16 %v668_v16, %v667_v15  ;;  %v652_v27 = vld [vmem:[#allocation8 + $0x28] sm:$0xff]  ;;  %v669_v29 = vld [vmem:[#allocation10 + $0x30] sm:$0xff]  ;;  %v670_v30 = vld [vmem:[#allocation10 + $0x38] sm:$0xff]  ;;  %s5416_s22 = smov 32   ;;  %s5417_s16 = smov 16   ;;  %vm2302_vm5 = vcmask 523264  }
  0xf5   : > { %4790 = vmatprep.subr.bf16.mxu1 %v5408_v5  ;;  %4766 = vmatprep.subr.bf16.mxu0 %v5408_v5  ;;  %v4770_v28 = vpack.c.bf16 %v652_v27, %v651_v26  ;;  %v5827_v31 = vpack.c.bf16 %v670_v30, %v669_v29  ;;  %v653_v32 = vld [vmem:[#allocation8 + $0x30] sm:$0xff]  ;;  %v654_v33 = vld [vmem:[#allocation8 + $0x38] sm:$0xff]  ;;  %v671_v35 = vld [vmem:[#allocation10 + $0x40] sm:$0xff]  ;;  %vm2304_vm6 = vcmask 654336   ;;  %vm2306_vm7 = vcmask 785408   ;;  %s6495_s1 = sld [smem:[#allocation32_spill]] }
  0xf6   : > { %v4773_v34 = vpack.c.bf16 %v654_v33, %v653_v32  ;;  %v672_v36 = vld [vmem:[#allocation10 + $0x48] sm:$0xff]  ;;  %v655_v38 = vld [vmem:[#allocation8 + $0x40] sm:$0xff]  ;;  %v673_v41 = vld [vmem:[#allocation10 + $0x50] sm:$0xff]  ;;  %vm2308_vm8 = vcmask 916480   ;;  %s4172_s9 = sshll.u32 %s5510_s14, 7  ;;  %s589_s8 = scalar_lea.vmem [#allocation14], %s5780_s17 }
  0xf7   : > { %4792 = vmatpush3.bf16.msra.mxu1 %v5808_v13  ;;  %v5832_v37 = vpack.c.bf16 %v672_v36, %v671_v35  ;;  %v656_v39 = vld [vmem:[#allocation8 + $0x48] sm:$0xff]  ;;  %v674_v42 = vld [vmem:[#allocation10 + $0x58] sm:$0xff]  ;;  %v657_v44 = vld [vmem:[#allocation8 + $0x50] sm:$0xff]  ;;  %s3927_s23 = scalar_lea.sflag [#allocation4], %s5777_s28  ;;  %s5418_s14 = smov [#allocation14]  }
  0xf8   : > { %4768 = vmatpush3.bf16.msra.mxu0 %v4767_v14  ;;  %4793 = vmatprep.subr.bf16.mxu1 %v5408_v5  ;;  %v4776_v40 = vpack.c.bf16 %v656_v39, %v655_v38  ;;  %v5837_v43 = vpack.c.bf16 %v674_v42, %v673_v41  ;;  %v658_v45 = vld [vmem:[#allocation8 + $0x58] sm:$0xff]  ;;  %v675_v46 = vld [vmem:[#allocation10 + $0x60] sm:$0xff]  ;;  %v676_v48 = vld [vmem:[#allocation10 + $0x68] sm:$0xff]  ;;  %s5323_s17 = sshll.u32 %s5418_s14, 4  ;;  %s5324_s17 = int_to_ptr.vmem [resolvable:$false] %s5323_s17 }
  0xf9   : > { %4769 = vmatprep.subr.bf16.mxu0 %v5408_v5  ;;  %v4779_v47 = vpack.c.bf16 %v658_v45, %v657_v44  ;;  %v5843_v50 = vpack.c.bf16 %v676_v48, %v675_v46  ;;  %v659_v51 = vld [vmem:[#allocation8 + $0x60] sm:$0xff]  ;;  %v660_v52 = vld [vmem:[#allocation8 + $0x68] sm:$0xff]  ;;  %v677_v53 = vld [vmem:[#allocation10 + $0x70] sm:$0xff] }
  0xfa   : > { %v678_v54 = vld [vmem:[#allocation10 + $0x78] sm:$0xff]  ;;  %v4782_v55 = vpack.c.bf16 %v660_v52, %v659_v51  ;;  %v661_v57 = vld [vmem:[#allocation8 + $0x70] sm:$0xff]  ;;  %v679_v12 = vld [vmem:[#allocation11] sm:$0xff] }
  0xfb   : > { %4795 = vmatpush3.bf16.msra.mxu1 %v5813_v17  ;;  %v5850_v56 = vpack.c.bf16 %v678_v54, %v677_v53  ;;  %v662_v58 = vld [vmem:[#allocation8 + $0x78] sm:$0xff]  ;;  %v5860_v3 = vld [vmem:[%s6416_s3] ss:$0 sm:$0xff]  ;;  %v680_v14 = vld [vmem:[#allocation11 + $0x8] sm:$0xff] }
  0xfc   : > { %4796 = vmatprep.subr.bf16.mxu1 %v5408_v5  ;;  %4771 = vmatpush3.bf16.msra.mxu0 %v4770_v28  ;;  %v4785_v59 = vpack.c.bf16 %v662_v58, %v661_v57  ;;  %v5866_v7 = vld [vmem:[%s6417_s4] ss:$0 sm:$0xff]  ;;  %v5872_v16 = vpack.c.bf16 %v680_v14, %v679_v12  ;;  %v686_v26 = vld [vmem:[#allocation11 + $0x38] sm:$0xff]  ;;  %v687_v28 = vld [vmem:[#allocation11 + $0x40] sm:$0xff] }
  0xfd   : > { %4772 = vmatprep.subr.bf16.mxu0 %v5408_v5  ;;  %v688_v29 = vld [vmem:[#allocation11 + $0x48] sm:$0xff]  ;;  %v689_v32 = vld [vmem:[#allocation11 + $0x50] sm:$0xff]  ;;  %v690_v33 = vld [vmem:[#allocation11 + $0x58] sm:$0xff] }
  0xfe   : > { %v5892_v30 = vpack.c.bf16 %v688_v29, %v687_v28  ;;  %v691_v35 = vld [vmem:[#allocation11 + $0x60] sm:$0xff]  ;;  %v692_v36 = vld [vmem:[#allocation11 + $0x68] sm:$0xff]  ;;  %v693_v39 = vld [vmem:[#allocation11 + $0x70] sm:$0xff] }
  0xff   : > { %4798 = vmatpush3.bf16.msra.mxu1 %v5827_v31  ;;  %v5900_v38 = vpack.c.bf16 %v692_v36, %v691_v35  ;;  %v5914_v42 = vld [vmem:[%s6491_s30] ss:$0 sm:$0xff]  ;;  %s3940_s30 = sshll.u32 %s589_s8, 4  ;;  %s6371_s30 = int_to_ptr.vmem [resolvable:$true] %s3940_s30 }
 0x100   : > { %4799 = vmatprep.subr.bf16.mxu1 %v5408_v5  ;;  %4774 = vmatpush3.bf16.msra.mxu0 %v4773_v34  ;;  %v5896_v34 = vpack.c.bf16 %v690_v33, %v689_v32  ;;  %v5934_v53 = vld [vmem:[%s6493_s12] ss:$0 sm:$0xff]  ;;  %s5319_s12 = scalar_lea.vmem %s6371_s30, 128  ;;  %p5326_p8 = scmp.lt.s32.totalorder %s6371_s30, %s5324_s17 }
 0x101   : > { %4775 = vmatprep.subr.bf16.mxu0 %v5408_v5  ;;  %p5320_p9 = scmp.ne.s32.totalorder %s6371_s30, %s5319_s12 }
 0x103   : > { %4801 = vmatpush3.bf16.msra.mxu1 %v5832_v37 }
 0x104   : > { %4802 = vmatprep.subr.bf16.mxu1 %v5408_v5  ;;  %4777 = vmatpush3.bf16.msra.mxu0 %v4776_v40  ;;  %v694_v40 = vld [vmem:[#allocation11 + $0x78] sm:$0xff] }
 0x105   : > { %4778 = vmatprep.subr.bf16.mxu0 %v5408_v5  ;;  %v5904_v41 = vpack.c.bf16 %v694_v40, %v693_v39 }
 0x107   : > { %4804 = vmatpush3.bf16.msra.mxu1 %v5837_v43 }
 0x108   : > { %4805 = vmatprep.subr.bf16.mxu1 %v5408_v5  ;;  %4780 = vmatpush3.bf16.msra.mxu0 %v4779_v47  ;;  %v4119_v47 = vld [vmem:[%s6492_s10] ss:$0 sm:$0xff]  ;;  %s6496_s10 = sld [smem:[#allocation33_spill]] }
 0x109   : > { %4781 = vmatprep.subr.bf16.mxu0 %v5408_v5 }
 0x10b   : > { %4807 = vmatpush3.bf16.msra.mxu1 %v5843_v50 }
 0x10c   : > { %4808 = vmatprep.subr.bf16.mxu1 %v5408_v5  ;;  %4783 = vmatpush3.bf16.msra.mxu0 %v4782_v55 }
 0x10d   : > { %4784 = vmatprep.subr.bf16.mxu0 %v5408_v5 }
 0x10e   : > { %s6369_s6 = scalar_lea.hbm %s6496_s10, %s4172_s9 }
 0x10f   : > { %4810 = vmatpush3.bf16.msra.mxu1 %v5850_v56 }
 0x110   : > { %4463 = vmatprep.subr.mxu1 %v5410_v49  ;;  %4786 = vmatpush3.bf16.msra.mxu0 %v4785_v59 }
 0x111   : > { %4811 = vmatprep.subr.bf16.mxu0 %v5408_v5 }
 0x17d   : > { %v622_v18 = vpop.xlane.xlu0 %621 }
 0x17e   : > { %v623_v19 = vmul.f32 0.0078125, %v622_v18 }
 0x180   : > { %v5819_v20 = vsub.f32 %v591_v0, %v623_v19  ;;  %v681_v19 = vld [vmem:[#allocation11 + $0x10] sm:$0xff] }
 0x181   : > { %v596_v21 = vpop.xlane.xlu0 %595 }
 0x182   : > { %v598_v22 = vmul.f32 0.0078125, %v596_v21  ;;  %v625_v23 = vmul.f32 %v5819_v20, %v5819_v20 }
 0x184   : > { %v5823_v24 = vsub.f32 %v590_v1, %v598_v22  ;;  %626 = vadd.xlane.f32.xlu1 %v625_v23  ;;  %v683_v22 = vld [vmem:[#allocation11 + $0x20] sm:$0xff]  ;;  %v684_v23 = vld [vmem:[#allocation11 + $0x28] sm:$0xff] }
 0x186   : > { %v600_v25 = vmul.f32 %v5823_v24, %v5823_v24 }
 0x188   : > { %601 = vadd.xlane.f32.xlu1 %v600_v25  ;;  %v685_v25 = vld [vmem:[#allocation11 + $0x30] sm:$0xff] }
 0x189   : > { %v5888_v27 = vpack.c.bf16 %v686_v26, %v685_v25 }
 0x211   : > { %v627_v60 = vpop.xlane.xlu1 %626 }
 0x212   : > { %v628_v61 = vmul.f32 0.0078125, %v627_v60 }
 0x214   : > { %v629_v62 = vadd.f32 1e-05, %v628_v61 }
 0x215   : > { %v602_v63 = vpop.xlane.xlu1 %601 }
 0x216   : > { %5045 = vrsqrt.f32 %v629_v62  ;;  %v603_v0 = vmul.f32 0.0078125, %v602_v63 }
 0x218   : > { %v604_v1 = vadd.f32 1e-05, %v603_v0 }
 0x21a   : > { %5047 = vrsqrt.f32 %v604_v1 }
 0x220   : > { %v5046_v2 = vpop.eup %5045 }
 0x221   : > { %v631_v4 = vmul.f32 %v5046_v2, %v5819_v20  ;;  %v682_v20 = vld [vmem:[#allocation11 + $0x18] sm:$0xff] }
 0x222   : > { %v5878_v21 = vpack.c.bf16 %v682_v20, %v681_v19 }
 0x223   : > { %v632_v8 = vmul.f32 %v5860_v3, %v631_v4 }
 0x224   : > { %v5048_v9 = vpop.eup %5047 }
 0x225   : > { %v633_v10 = vadd.f32 %v5866_v7, %v632_v8  ;;  %v606_v11 = vmul.f32 %v5048_v9, %v5823_v24  ;;  %v5884_v24 = vpack.c.bf16 %v684_v23, %v683_v22 }
 0x227   : > { %4426 = vmatmul.mubr.f32.vlgmr.msra.gmra.mrb[0].mxu1 %v633_v10  ;;  %v613_v15 = vmul.f32 %v5860_v3, %v606_v11 }
 0x228   : > { %4465 = vmatprep.mubr.msk.f32.mxu1 %vm5409_vm0, %v5410_v49 }
 0x229   : > { %v620_v18 = vadd.f32 %v5866_v7, %v613_v15 }
 0x22b   : > { %4391 = vmatmul.mubr.f32.vlgmr.msra.gmra.mrb[0].mxu0 %v620_v18 }
 0x22c   : > { %4813 = vmatpush3.bf16.msra.mxu0 %v5872_v16  ;;  %4460 = vmatprep.mubr.msk.f32.mxu0 %vm5409_vm0, %v5410_v49 }
 0x22d   : > { %4814 = vmatprep.subr.bf16.mxu0 %v5408_v5 }
 0x230   : > { %4816 = vmatpush3.bf16.msra.mxu0 %v5878_v21 }
 0x231   : > { %4817 = vmatprep.subr.bf16.mxu0 %v5408_v5 }
 0x234   : > { %4819 = vmatpush3.bf16.msra.mxu0 %v5884_v24 }
 0x235   : > { %4820 = vmatprep.subr.bf16.mxu0 %v5408_v5 }
 0x238   : > { %4822 = vmatpush3.bf16.msra.mxu0 %v5888_v27 }
 0x239   : > { %4823 = vmatprep.subr.bf16.mxu0 %v5408_v5 }
 0x23c   : > { %4825 = vmatpush3.bf16.msra.mxu0 %v5892_v30 }
 0x23d   : > { %4826 = vmatprep.subr.bf16.mxu0 %v5408_v5 }
 0x240   : > { %4828 = vmatpush3.bf16.msra.mxu0 %v5896_v34 }
 0x241   : > { %4829 = vmatprep.subr.bf16.mxu0 %v5408_v5 }
 0x244   : > { %4831 = vmatpush3.bf16.msra.mxu0 %v5900_v38 }
 0x245   : > { %4832 = vmatprep.subr.bf16.mxu0 %v5408_v5 }
 0x248   : > { %4834 = vmatpush3.bf16.msra.mxu0 %v5904_v41 }
 0x249   : > { %4835 = vmatprep.subr.bf16.mxu0 %v5408_v5 }
 0x24b   : > { %4461 = vmatmul.mubr.f32.vlgmr.msra.gmra.mrb[2].mxu0 %v633_v10 }
 0x24c   : > { %4575 = vmatprep.mubr.msk.f32.mxu0 %vm5409_vm0, %v5410_v49 }
 0x2fa   : > { %v863_v44 = vpop.f32.mrb[0].mxu1 }
 0x2fb   : > { %v5917_v45 = vadd.f32 %v5914_v42, %v863_v44  ;;  %v4427_v46 = vpop.f32.mrb[1].mxu1 }
 0x2fd   : > { %4464 = vmatpush3.xpose.msk.msra.mxu1 %vm943_vm1, %v5917_v45 }
 0x2fe   : > { %v787_v48 = vpop.f32.mrb[0].mxu0  ;;  %4468 = vmatprep.subr.mxu1 %v5410_v49 }
 0x2ff   : > { %v5925_v51 = vadd.f32 %v4119_v47, %v787_v48  ;;  %v4392_v52 = vpop.f32.mrb[1].mxu0 }
 0x301   : > { %4466 = vmatmul.mubr.msk.f32.vlgmr.msra.gmra.mrb[2].mxu1 %vm943_vm1, %v5925_v51 }
 0x302   : > { %4470 = vmatprep.mubr.msk.f32.mxu1 %vm5409_vm0, %v5410_v49 }
 0x31e   : > { %v939_v54 = vpop.f32.mrb[2].mxu0 }
 0x31f   : > { %v5937_v55 = vadd.f32 %v5934_v53, %v939_v54  ;;  %v4462_v57 = vpop.f32.mrb[3].mxu0 }
 0x321   : > { %4469 = vmatpush3.msra.mxu1 %v5937_v55 }
 0x322   : > { %4473 = vmatprep.subr.mxu1 %v5410_v49 }
 0x3d4   : > { %v1016_v58 = vpop.f32.mrb[2].mxu1 }
 0x3d5   : > { %v1020_v59 = vmul.f32 0.088388346, %v1016_v58  ;;  %v4467_v60 = vpop.f32.mrb[3].mxu1 }
 0x3d7   : > { %v1022_v61 = vsel %vm1021_vm2, %v1020_v59, -inf }
 0x3d8   : > { %1023 = vmax.xlane.f32.xlu0 %v1022_v61 }
 0x3ee   : > { %1108 = vrot.lane.b32.xlu0 %v5917_v45, %s5411_s25 }
 0x465   : > { %v1024_v62 = vpop.xlane.xlu0 %1023 }
 0x466   : > { %v1025_v63 = vsub.f32 %v1020_v59, %v1024_v62 }
 0x468   : > { %v1026_v0 = vmul.f32 1.442695, %v1025_v63 }
 0x469   : > { %v1109_v10 = vpop.permute.xlu0 %1108 }
 0x46a   : > { %5049 = vpow2.f32 %v1026_v0 }
 0x474   : > { %v5050_v1 = vpop.eup %5049 }
 0x475   : > { %v1028_v2 = vsel %vm1021_vm2, %v5050_v1, 0.0 }
 0x476   : > { %1029 = vadd.xlane.f32.xlu1 %v1028_v2 }
 0x487   : > { %1106 = vrot.lane.b32.xlu1 %v5925_v51, %s5411_s25 }
 0x503   : > { %v1030_v4 = vpop.xlane.xlu1 %1029 }
 0x504   : > { %5051 = vrcp.f32 %v1030_v4 }
 0x507   : > { %v5952_v11 = vpop.permute.xlu1 %1106 }
 0x50e   : > { %v5052_v8 = vpop.eup %5051 }
 0x50f   : > { %v1032_v9 = vmul.f32 %v5052_v8, %v5050_v1 }
 0x511   : > { %4471 = vmatmul.mubr.msk.f32.vlgmr.msra.gmra.mrb[4].mxu1 %vm1021_vm2, %v1032_v9 }
 0x512   : > { %4474 = vmatpush3.xpose.msk.msra.mxu1 %vm943_vm1, %v1109_v10  ;;  %4475 = vmatprep.mubr.msk.f32.mxu1 %vm5409_vm0, %v5410_v49 }
 0x513   : > { %4478 = vmatprep.subr.mxu1 %v5410_v49 }
 0x515   : > { %4476 = vmatmul.mubr.msk.f32.vlgmr.msra.gmra.mrb[6].mxu1 %vm943_vm1, %v5952_v11 }
 0x516   : > { %4480 = vmatprep.mubr.msk.f32.mxu1 %vm5409_vm0, %v5410_v49 }
 0x5e4   : > { %v5958_v12 = vpop.f32.mrb[4].mxu1 }
 0x5e5   : > { %v4472_v14 = vpop.f32.mrb[5].mxu1 }
 0x5e8   : > { %v1180_v15 = vpop.f32.mrb[6].mxu1 }
 0x5e9   : > { %v1184_v18 = vmul.f32 0.088388346, %v1180_v15  ;;  %v4477_v19 = vpop.f32.mrb[7].mxu1 }
 0x5eb   : > { %v1185_v20 = vsel %vm1021_vm2, %v1184_v18, -inf }
 0x5ec   : > { %1186 = vmax.xlane.f32.xlu1 %v1185_v20 }
 0x5fd   : > { %1275 = vrot.lane.b32.xlu1 %v5917_v45, %s5412_s13 }
 0x601   : > { %1273 = vrot.lane.b32.xlu1 %v5925_v51, %s5412_s13 }
 0x679   : > { %v1187_v22 = vpop.xlane.xlu1 %1186 }
 0x67a   : > { %v1188_v23 = vsub.f32 %v1184_v18, %v1187_v22 }
 0x67c   : > { %v1189_v25 = vmul.f32 1.442695, %v1188_v23 }
 0x67d   : > { %v1276_v35 = vpop.permute.xlu1 %1275 }
 0x67e   : > { %5053 = vpow2.f32 %v1189_v25 }
 0x681   : > { %v5974_v39 = vpop.permute.xlu1 %1273 }
 0x688   : > { %v5054_v26 = vpop.eup %5053 }
 0x689   : > { %v1191_v28 = vsel %vm1021_vm2, %v5054_v26, 0.0 }
 0x68a   : > { %1192 = vadd.xlane.f32.xlu0 %v1191_v28 }
 0x6a0   : > { %1197 = vrot.lane.b32.xlu0 %v5937_v55, %s5411_s25 }
 0x717   : > { %v1193_v29 = vpop.xlane.xlu0 %1192 }
 0x718   : > { %5055 = vrcp.f32 %v1193_v29 }
 0x71b   : > { %v1198_v32 = vpop.permute.xlu0 %1197 }
 0x71c   : > { %4479 = vmatpush3.msra.mxu1 %v1198_v32 }
 0x71d   : > { %4483 = vmatprep.subr.mxu1 %v5410_v49 }
 0x722   : > { %v5056_v33 = vpop.eup %5055 }
 0x723   : > { %v1195_v36 = vmul.f32 %v5056_v33, %v5054_v26 }
 0x725   : > { %4481 = vmatmul.mubr.msk.f32.vlgmr.msra.gmra.mrb[8].mxu1 %vm1021_vm2, %v1195_v36 }
 0x726   : > { %4484 = vmatpush3.xpose.msk.msra.mxu1 %vm943_vm1, %v1276_v35  ;;  %4485 = vmatprep.mubr.msk.f32.mxu1 %vm5409_vm0, %v5410_v49 }
 0x727   : > { %4488 = vmatprep.subr.mxu1 %v5410_v49 }
 0x729   : > { %4486 = vmatmul.mubr.msk.f32.vlgmr.msra.gmra.mrb[10].mxu1 %vm943_vm1, %v5974_v39 }
 0x72a   : > { %4490 = vmatprep.mubr.msk.f32.mxu1 %vm5409_vm0, %v5410_v49 }
 0x7f8   : > { %v5980_v40 = vpop.f32.mrb[8].mxu1 }
 0x7f9   : > { %v4482_v44 = vpop.f32.mrb[9].mxu1 }
 0x7fc   : > { %v1347_v46 = vpop.f32.mrb[10].mxu1 }
 0x7fd   : > { %v1351_v47 = vmul.f32 0.088388346, %v1347_v46  ;;  %v4487_v48 = vpop.f32.mrb[11].mxu1 }
 0x7ff   : > { %v1352_v52 = vsel %vm1021_vm2, %v1351_v47, -inf }
 0x800   : > { %1353 = vmax.xlane.f32.xlu1 %v1352_v52 }
 0x811   : > { %1441 = vrot.lane.b32.xlu1 %v5917_v45, %s5413_s18 }
 0x815   : > { %1439 = vrot.lane.b32.xlu1 %v5925_v51, %s5413_s18 }
 0x88d   : > { %v1354_v54 = vpop.xlane.xlu1 %1353 }
 0x88e   : > { %v1355_v57 = vsub.f32 %v1351_v47, %v1354_v54 }
 0x890   : > { %v1356_v58 = vmul.f32 1.442695, %v1355_v57 }
 0x891   : > { %v1442_v0 = vpop.permute.xlu1 %1441 }
 0x892   : > { %5057 = vpow2.f32 %v1356_v58 }
 0x895   : > { %v5996_v2 = vpop.permute.xlu1 %1439 }
 0x89c   : > { %v5058_v59 = vpop.eup %5057 }
 0x89d   : > { %v1358_v60 = vsel %vm1021_vm2, %v5058_v59, 0.0 }
 0x89e   : > { %1359 = vadd.xlane.f32.xlu0 %v1358_v60 }
 0x8b4   : > { %1363 = vrot.lane.b32.xlu0 %v5937_v55, %s5412_s13 }
 0x92b   : > { %v1360_v61 = vpop.xlane.xlu0 %1359 }
 0x92c   : > { %5059 = vrcp.f32 %v1360_v61 }
 0x92f   : > { %v1364_v62 = vpop.permute.xlu0 %1363 }
 0x930   : > { %4489 = vmatpush3.msra.mxu1 %v1364_v62 }
 0x931   : > { %4493 = vmatprep.subr.mxu1 %v5410_v49 }
 0x936   : > { %v5060_v63 = vpop.eup %5059 }
 0x937   : > { %v1362_v1 = vmul.f32 %v5060_v63, %v5058_v59 }
 0x939   : > { %4491 = vmatmul.mubr.msk.f32.vlgmr.msra.gmra.mrb[12].mxu1 %vm1021_vm2, %v1362_v1 }
 0x93a   : > { %4494 = vmatpush3.xpose.msk.msra.mxu1 %vm943_vm1, %v1442_v0  ;;  %4495 = vmatprep.mubr.msk.f32.mxu1 %vm5409_vm0, %v5410_v49 }
 0x93b   : > { %4498 = vmatprep.subr.mxu1 %v5410_v49 }
 0x93d   : > { %4496 = vmatmul.mubr.msk.f32.vlgmr.msra.gmra.mrb[14].mxu1 %vm943_vm1, %v5996_v2 }
 0x93e   : > { %4500 = vmatprep.mubr.msk.f32.mxu1 %vm5409_vm0, %v5410_v49 }
 0xa0c   : > { %v6002_v4 = vpop.f32.mrb[12].mxu1 }
 0xa0d   : > { %v4492_v8 = vpop.f32.mrb[13].mxu1 }
 0xa10   : > { %v1513_v9 = vpop.f32.mrb[14].mxu1 }
 0xa11   : > { %v1517_v10 = vmul.f32 0.088388346, %v1513_v9  ;;  %v4497_v14 = vpop.f32.mrb[15].mxu1 }
 0xa13   : > { %v1518_v15 = vsel %vm1021_vm2, %v1517_v10, -inf }
 0xa14   : > { %1519 = vmax.xlane.f32.xlu0 %v1518_v15 }
 0xa2a   : > { %1529 = vrot.lane.b32.xlu0 %v5937_v55, %s5413_s18 }
 0xa2e   : > { %1605 = vrot.lane.b32.xlu0 %v5925_v51, %s5414_s15 }
 0xaa1   : > { %v1520_v18 = vpop.xlane.xlu0 %1519 }
 0xaa2   : > { %v1521_v19 = vsub.f32 %v1517_v10, %v1520_v18 }
 0xaa4   : > { %v1522_v20 = vmul.f32 1.442695, %v1521_v19 }
 0xaa5   : > { %v1530_v22 = vpop.permute.xlu0 %1529 }
 0xaa6   : > { %5061 = vpow2.f32 %v1522_v20  ;;  %4499 = vmatpush3.msra.mxu1 %v1530_v22 }
 0xaa7   : > { %4503 = vmatprep.subr.mxu1 %v5410_v49 }
 0xaa9   : > { %v6018_v33 = vpop.permute.xlu0 %1605 }
 0xab0   : > { %v5062_v23 = vpop.eup %5061 }
 0xab1   : > { %v1524_v25 = vsel %vm1021_vm2, %v5062_v23, 0.0 }
 0xab2   : > { %1525 = vadd.xlane.f32.xlu1 %v1524_v25 }
 0xac3   : > { %1607 = vrot.lane.b32.xlu1 %v5917_v45, %s5414_s15 }
 0xb3f   : > { %v1526_v26 = vpop.xlane.xlu1 %1525 }
 0xb40   : > { %5063 = vrcp.f32 %v1526_v26 }
 0xb43   : > { %v1608_v32 = vpop.permute.xlu1 %1607 }
 0xb4a   : > { %v5064_v28 = vpop.eup %5063 }
 0xb4b   : > { %v1528_v29 = vmul.f32 %v5064_v28, %v5062_v23 }
 0xb4d   : > { %4501 = vmatmul.mubr.msk.f32.vlgmr.msra.gmra.mrb[16].mxu1 %vm1021_vm2, %v1528_v29 }
 0xb4e   : > { %4504 = vmatpush3.xpose.msk.msra.mxu1 %vm943_vm1, %v1608_v32  ;;  %4505 = vmatprep.mubr.msk.f32.mxu1 %vm5409_vm0, %v5410_v49 }
 0xb4f   : > { %4508 = vmatprep.subr.mxu1 %v5410_v49 }
 0xb51   : > { %4506 = vmatmul.mubr.msk.f32.vlgmr.msra.gmra.mrb[18].mxu1 %vm943_vm1, %v6018_v33 }
 0xb52   : > { %4510 = vmatprep.mubr.msk.f32.mxu1 %vm5409_vm0, %v5410_v49 }
 0xc20   : > { %v6024_v35 = vpop.f32.mrb[16].mxu1 }
 0xc21   : > { %v4502_v36 = vpop.f32.mrb[17].mxu1 }
 0xc24   : > { %v1679_v44 = vpop.f32.mrb[18].mxu1 }
 0xc25   : > { %v1683_v46 = vmul.f32 0.088388346, %v1679_v44  ;;  %v4507_v47 = vpop.f32.mrb[19].mxu1 }
 0xc27   : > { %v1684_v48 = vsel %vm1021_vm2, %v1683_v46, -inf }
 0xc28   : > { %1685 = vmax.xlane.f32.xlu1 %v1684_v48 }
 0xc39   : > { %1773 = vrot.lane.b32.xlu1 %v5917_v45, %s5415_s29 }
 0xc3d   : > { %1771 = vrot.lane.b32.xlu1 %v5925_v51, %s5415_s29 }
 0xcb5   : > { %v1686_v52 = vpop.xlane.xlu1 %1685 }
 0xcb6   : > { %v1687_v54 = vsub.f32 %v1683_v46, %v1686_v52 }
 0xcb8   : > { %v1688_v57 = vmul.f32 1.442695, %v1687_v54 }
 0xcb9   : > { %v1774_v63 = vpop.permute.xlu1 %1773 }
 0xcba   : > { %5065 = vpow2.f32 %v1688_v57 }
 0xcbd   : > { %v6040_v1 = vpop.permute.xlu1 %1771 }
 0xcc4   : > { %v5066_v58 = vpop.eup %5065 }
 0xcc5   : > { %v1690_v59 = vsel %vm1021_vm2, %v5066_v58, 0.0 }
 0xcc6   : > { %1691 = vadd.xlane.f32.xlu0 %v1690_v59 }
 0xcdc   : > { %1695 = vrot.lane.b32.xlu0 %v5937_v55, %s5414_s15 }
 0xd53   : > { %v1692_v60 = vpop.xlane.xlu0 %1691 }
 0xd54   : > { %5067 = vrcp.f32 %v1692_v60 }
 0xd57   : > { %v1696_v61 = vpop.permute.xlu0 %1695 }
 0xd58   : > { %4509 = vmatpush3.msra.mxu1 %v1696_v61 }
 0xd59   : > { %4513 = vmatprep.subr.mxu1 %v5410_v49 }
 0xd5e   : > { %v5068_v62 = vpop.eup %5067 }
 0xd5f   : > { %v1694_v0 = vmul.f32 %v5068_v62, %v5066_v58  ;;  %v592_v58 = vld [vmem:[%s521_s20] sm:$0xff]  ;;  %s6494_s20 = sld [smem:[#allocation24_spill]] }
 0xd61   : > { %4511 = vmatmul.mubr.msk.f32.vlgmr.msra.gmra.mrb[20].mxu1 %vm1021_vm2, %v1694_v0 }
 0xd62   : > { %4514 = vmatpush3.xpose.msk.msra.mxu1 %vm943_vm1, %v1774_v63  ;;  %4515 = vmatprep.mubr.msk.f32.mxu1 %vm5409_vm0, %v5410_v49 }
 0xd63   : > { %4518 = vmatprep.subr.mxu1 %v5410_v49 }
 0xd65   : > { %4516 = vmatmul.mubr.msk.f32.vlgmr.msra.gmra.mrb[22].mxu1 %vm943_vm1, %v6040_v1  ;;  %p6497_p13 = scmp.ne.s32.totalorder %s6494_s20, 0 }
 0xd66   : > { %4520 = vmatprep.mubr.msk.f32.mxu1 %vm5409_vm0, %v5410_v49 }
 0xd67   : > { %p5321_p1 = pnand %p5320_p9, %p6497_p13 }
 0xd69   : > { %p5322_p11 = pneg %p5321_p1 }
 0xe34   : > { %v6046_v8 = vpop.f32.mrb[20].mxu1 }
 0xe35   : > { %v4512_v9 = vpop.f32.mrb[21].mxu1 }
 0xe38   : > { %v1845_v10 = vpop.f32.mrb[22].mxu1 }
 0xe39   : > { %v1849_v14 = vmul.f32 0.088388346, %v1845_v10  ;;  %v4517_v15 = vpop.f32.mrb[23].mxu1 }
 0xe3b   : > { %v1850_v18 = vsel %vm1021_vm2, %v1849_v14, -inf }
 0xe3c   : > { %1851 = vmax.xlane.f32.xlu0 %v1850_v18 }
 0xe52   : > { %1861 = vrot.lane.b32.xlu0 %v5937_v55, %s5415_s29 }
 0xe56   : > { %1937 = vrot.lane.b32.xlu0 %v5925_v51, %s5416_s22 }
 0xec9   : > { %v1852_v19 = vpop.xlane.xlu0 %1851 }
 0xeca   : > { %v1853_v20 = vsub.f32 %v1849_v14, %v1852_v19 }
 0xecc   : > { %v1854_v22 = vmul.f32 1.442695, %v1853_v20 }
 0xecd   : > { %v1862_v23 = vpop.permute.xlu0 %1861 }
 0xece   : > { %5069 = vpow2.f32 %v1854_v22  ;;  %4519 = vmatpush3.msra.mxu1 %v1862_v23 }
 0xecf   : > { %4523 = vmatprep.subr.mxu1 %v5410_v49 }
 0xed1   : > { %v6062_v44 = vpop.permute.xlu0 %1937 }
 0xed8   : > { %v5070_v25 = vpop.eup %5069 }
 0xed9   : > { %v1856_v26 = vsel %vm1021_vm2, %v5070_v25, 0.0 }
 0xeda   : > { %1857 = vadd.xlane.f32.xlu1 %v1856_v26 }
 0xeeb   : > { %1939 = vrot.lane.b32.xlu1 %v5917_v45, %s5416_s22 }
 0xf67   : > { %v1858_v28 = vpop.xlane.xlu1 %1857 }
 0xf68   : > { %5071 = vrcp.f32 %v1858_v28 }
 0xf6b   : > { %v1940_v36 = vpop.permute.xlu1 %1939 }
 0xf72   : > { %v5072_v29 = vpop.eup %5071 }
 0xf73   : > { %v1860_v32 = vmul.f32 %v5072_v29, %v5070_v25 }
 0xf75   : > { %4521 = vmatmul.mubr.msk.f32.vlgmr.msra.gmra.mrb[24].mxu1 %vm1021_vm2, %v1860_v32 }
 0xf76   : > { %4524 = vmatpush3.xpose.msk.msra.mxu1 %vm943_vm1, %v1940_v36  ;;  %4525 = vmatprep.mubr.msk.f32.mxu1 %vm5409_vm0, %v5410_v49 }
 0xf77   : > { %4528 = vmatprep.subr.mxu1 %v5410_v49 }
 0xf79   : > { %4526 = vmatmul.mubr.msk.f32.vlgmr.msra.gmra.mrb[26].mxu1 %vm943_vm1, %v6062_v44 }
 0xf7a   : > { %4530 = vmatprep.mubr.msk.f32.mxu1 %vm5409_vm0, %v5410_v49 }
0x1048   : > { %v1933_v46 = vpop.f32.mrb[24].mxu1 }
0x1049   : > { %v4522_v47 = vpop.f32.mrb[25].mxu1 }
0x104c   : > { %v2011_v48 = vpop.f32.mrb[26].mxu1 }
0x104d   : > { %v2015_v52 = vmul.f32 0.088388346, %v2011_v48  ;;  %v4527_v54 = vpop.f32.mrb[27].mxu1 }
0x104f   : > { %v2016_v57 = vsel %vm1021_vm2, %v2015_v52, -inf }
0x1050   : > { %2017 = vmax.xlane.f32.xlu1 %v2016_v57 }
0x1061   : > { %2105 = vrot.lane.b32.xlu1 %v5917_v45, %s5417_s16 }
0x1065   : > { %2103 = vrot.lane.b32.xlu1 %v5925_v51, %s5417_s16 }
0x1089   : > { %634 = vadd.xlane.f32.xlu1 %v592_v58 }
0x109a   : > { %2270 = vrot.lane.b32.xlu1 %v5980_v40, %s5417_s16 }
0x109e   : > { %2274 = vrot.lane.b32.xlu1 %v6002_v4, %s5416_s22 }
0x10a2   : > { %2278 = vrot.lane.b32.xlu1 %v6024_v35, %s5415_s29 }
0x10a6   : > { %2286 = vrot.lane.b32.xlu1 %v1933_v46, %s5413_s18 }
0x10dd   : > { %v2018_v59 = vpop.xlane.xlu1 %2017 }
0x10de   : > { %v2019_v60 = vsub.f32 %v2015_v52, %v2018_v59  ;;  %v698_v59 = vld [vmem:[#allocation13 + $0x18] sm:$0xff] }
0x10e0   : > { %v2020_v45 = vmul.f32 1.442695, %v2019_v60 }
0x10e1   : > { %v2106_v35 = vpop.permute.xlu1 %2105 }
0x10e2   : > { %5073 = vpow2.f32 %v2020_v45  ;;  %v701_v45 = vld [vmem:[#allocation13 + $0x30] sm:$0xff] }
0x10e5   : > { %v6091_v9 = vpop.permute.xlu1 %2103 }
0x10ec   : > { %v5074_v61 = vpop.eup %5073 }
0x10ed   : > { %v2022_v62 = vsel %vm1021_vm2, %v5074_v61, 0.0 }
0x10ee   : > { %2023 = vadd.xlane.f32.xlu0 %v2022_v62 }
0x1104   : > { %2027 = vrot.lane.b32.xlu0 %v5937_v55, %s5416_s22 }
0x1116   : > { %v635_v10 = vpop.xlane.xlu1 %634 }
0x1117   : > { %v636_v14 = vmul.f32 0.0078125, %v635_v10 }
0x1119   : > { %v637_v19 = vsub.f32 %v592_v58, %v636_v14  ;;  %v707_v14 = vld [vmem:[#allocation13 + $0x60] sm:$0xff] }
0x111b   : > { %v638_v26 = vmul.f32 %v637_v19, %v637_v19 }
0x117b   : > { %v2024_v40 = vpop.xlane.xlu0 %2023 }
0x117c   : > { %5075 = vrcp.f32 %v2024_v40  ;;  %v703_v40 = vld [vmem:[#allocation13 + $0x40] sm:$0xff] }
0x117f   : > { %v2028_v63 = vpop.permute.xlu0 %2027 }
0x1180   : > { %4529 = vmatpush3.msra.mxu1 %v2028_v63  ;;  %v704_v63 = vld [vmem:[#allocation13 + $0x48] sm:$0xff] }
0x1181   : > { %4533 = vmatprep.subr.mxu1 %v5410_v49 }
0x1186   : > { %v5076_v4 = vpop.eup %5075 }
0x1187   : > { %v2026_v0 = vmul.f32 %v5076_v4, %v5074_v61  ;;  %v702_v61 = vld [vmem:[#allocation13 + $0x38] sm:$0xff]  ;;  %v6146_v4 = vpack.c.bf16 %v704_v63, %v703_v40 }
0x1188   : > { %v6142_v62 = vpack.c.bf16 %v702_v61, %v701_v45 }
0x1189   : > { %4531 = vmatmul.mubr.msk.f32.vlgmr.msra.gmra.mrb[28].mxu1 %vm1021_vm2, %v2026_v0  ;;  %v706_v0 = vld [vmem:[#allocation13 + $0x58] sm:$0xff] }
0x118a   : > { %4534 = vmatpush3.xpose.msk.msra.mxu1 %vm943_vm1, %v2106_v35  ;;  %4535 = vmatprep.mubr.msk.f32.mxu1 %vm5409_vm0, %v5410_v49  ;;  %v705_v35 = vld [vmem:[#allocation13 + $0x50] sm:$0xff] }
0x118b   : > { %4538 = vmatprep.subr.mxu1 %v5410_v49  ;;  %v6150_v10 = vpack.c.bf16 %v706_v0, %v705_v35 }
0x118d   : > { %4536 = vmatmul.mubr.msk.f32.vlgmr.msra.gmra.mrb[30].mxu1 %vm943_vm1, %v6091_v9 }
0x118e   : > { %4540 = vmatprep.mubr.msk.f32.mxu1 %vm5409_vm0, %v5410_v49 }
0x125c   : > { %v2099_v15 = vpop.f32.mrb[28].mxu1 }
0x125d   : > { %v4532_v18 = vpop.f32.mrb[29].mxu1 }
0x1260   : > { %v2177_v20 = vpop.f32.mrb[30].mxu1 }
0x1261   : > { %v2181_v22 = vmul.f32 0.088388346, %v2177_v20  ;;  %v4537_v23 = vpop.f32.mrb[31].mxu1  ;;  %v710_v20 = vld [vmem:[#allocation13 + $0x78] sm:$0xff] }
0x1263   : > { %v2182_v25 = vsel %vm1021_vm2, %v2181_v22, -inf }
0x1264   : > { %2183 = vmax.xlane.f32.xlu0 %v2182_v25 }
0x1268   : > { %639 = vadd.xlane.f32.xlu0 %v638_v26 }
0x12f1   : > { %v2184_v28 = vpop.xlane.xlu0 %2183 }
0x12f2   : > { %v2185_v29 = vsub.f32 %v2181_v22, %v2184_v28 }
0x12f4   : > { %v2186_v32 = vmul.f32 1.442695, %v2185_v29 }
0x12f5   : > { %v640_v47 = vpop.xlane.xlu0 %639 }
0x12f6   : > { %5077 = vpow2.f32 %v2186_v32  ;;  %v641_v58 = vmul.f32 0.0078125, %v640_v47  ;;  %v2271_v32 = vpop.permute.xlu1 %2270 }
0x1300   : > { %v5078_v36 = vpop.eup %5077 }
0x1301   : > { %v2188_v46 = vsel %vm1021_vm2, %v5078_v36, 0.0 }
0x1302   : > { %2189 = vadd.xlane.f32.xlu0 %v2188_v46 }
0x1318   : > { %2193 = vrot.lane.b32.xlu0 %v5937_v55, %s5417_s16  ;;  %v642_v55 = vadd.f32 1e-05, %v641_v58 }
0x131c   : > { %2282 = vrot.lane.b32.xlu0 %v6046_v8, %s5414_s15  ;;  %v697_v8 = vld [vmem:[#allocation13 + $0x10] sm:$0xff] }
0x1320   : > { %2290 = vrot.lane.b32.xlu0 %v2099_v15, %s5412_s13  ;;  %v708_v15 = vld [vmem:[#allocation13 + $0x68] sm:$0xff] }
0x1321   : > { %v6154_v18 = vpack.c.bf16 %v708_v15, %v707_v14 }
0x138f   : > { %v2190_v48 = vpop.xlane.xlu0 %2189 }
0x1390   : > { %5079 = vrcp.f32 %v2190_v48 }
0x1391   : > { %5081 = vrsqrt.f32 %v642_v55 }
0x1393   : > { %v2194_v52 = vpop.permute.xlu0 %2193 }
0x1394   : > { %4539 = vmatpush3.msra.mxu1 %v2194_v52 }
0x1395   : > { %4859 = vmatprep.subr.bf16.mxu1 %v5408_v5 }
0x1397   : > { %v2283_v47 = vpop.permute.xlu0 %2282 }
0x139a   : > { %v5080_v54 = vpop.eup %5079 }
0x139b   : > { %v2192_v57 = vmul.f32 %v5080_v54, %v5078_v36  ;;  %v2275_v36 = vpop.permute.xlu1 %2274 }
0x139d   : > { %4541 = vmatmul.mubr.msk.f32.vlgmr.msra.gmra.mrb[32].mxu1 %vm1021_vm2, %v2192_v57  ;;  %v2291_v57 = vpop.permute.xlu0 %2290 }
0x139e   : > { %4861 = vmatpush3.bf16.msra.mxu1 %v5804_v6  ;;  %4610 = vmatprep.mubr.msk.f32.mxu1 %vm5409_vm0, %v5410_v49  ;;  %v5082_v6 = vpop.eup %5081 }
0x139f   : > { %4862 = vmatprep.subr.bf16.mxu1 %v5408_v5  ;;  %v2279_v46 = vpop.permute.xlu1 %2278 }
0x13a2   : > { %4864 = vmatpush3.bf16.msra.mxu1 %v5808_v13  ;;  %v644_v13 = vmul.f32 %v5082_v6, %v637_v19  ;;  %v709_v19 = vld [vmem:[#allocation13 + $0x70] sm:$0xff] }
0x13a3   : > { %4865 = vmatprep.subr.bf16.mxu1 %v5408_v5  ;;  %v6158_v22 = vpack.c.bf16 %v710_v20, %v709_v19  ;;  %v2287_v54 = vpop.permute.xlu1 %2286 }
0x13a6   : > { %4867 = vmatpush3.bf16.msra.mxu1 %v5813_v17  ;;  %v645_v17 = vmul.f32 %v5860_v3, %v644_v13  ;;  %v6134_v3 = vpack.c.bf16 %v698_v59, %v697_v8 }
0x13a7   : > { %4868 = vmatprep.subr.bf16.mxu1 %v5408_v5 }
0x13aa   : > { %4870 = vmatpush3.bf16.msra.mxu1 %v5827_v31  ;;  %v6125_v31 = vadd.f32 %v5866_v7, %v645_v17  ;;  %v700_v7 = vld [vmem:[#allocation13 + $0x28] sm:$0xff] }
0x13ab   : > { %4871 = vmatprep.subr.bf16.mxu1 %v5408_v5 }
0x13ae   : > { %4873 = vmatpush3.bf16.msra.mxu1 %v5832_v37  ;;  %v695_v37 = vld [vmem:[#allocation13] sm:$0xff] }
0x13af   : > { %4874 = vmatprep.subr.bf16.mxu1 %v5408_v5 }
0x13b2   : > { %4876 = vmatpush3.bf16.msra.mxu1 %v5837_v43  ;;  %v696_v43 = vld [vmem:[#allocation13 + $0x8] sm:$0xff] }
0x13b3   : > { %4877 = vmatprep.subr.bf16.mxu1 %v5408_v5 }
0x13b6   : > { %4879 = vmatpush3.bf16.msra.mxu1 %v5843_v50  ;;  %v6131_v50 = vpack.c.bf16 %v696_v43, %v695_v37 }
0x13b7   : > { %4880 = vmatprep.subr.bf16.mxu1 %v5408_v5 }
0x13b8   : > { %4837 = vmatpush3.bf16.msra.mxu0 %v6131_v50 }
0x13b9   : > { %4838 = vmatprep.subr.bf16.mxu0 %v5408_v5 }
0x13ba   : > { %4882 = vmatpush3.bf16.msra.mxu1 %v5850_v56  ;;  %v699_v56 = vld [vmem:[#allocation13 + $0x20] sm:$0xff] }
0x13bb   : > { %4648 = vmatprep.subr.mxu1 %v5410_v49  ;;  %v6138_v60 = vpack.c.bf16 %v700_v7, %v699_v56 }
0x13bc   : > { %4840 = vmatpush3.bf16.msra.mxu0 %v6134_v3 }
0x13bd   : > { %4611 = vmatmul.mubr.f32.vlgmr.msra.gmra.mrb[34].mxu1 %v6125_v31  ;;  %4841 = vmatprep.subr.bf16.mxu0 %v5408_v5 }
0x13be   : > { %4650 = vmatprep.mubr.msk.f32.mxu1 %vm5409_vm0, %v5410_v49 }
0x13c0   : > { %4843 = vmatpush3.bf16.msra.mxu0 %v6138_v60 }
0x13c1   : > { %4844 = vmatprep.subr.bf16.mxu0 %v5408_v5 }
0x13c4   : > { %4846 = vmatpush3.bf16.msra.mxu0 %v6142_v62 }
0x13c5   : > { %4847 = vmatprep.subr.bf16.mxu0 %v5408_v5 }
0x13c8   : > { %4849 = vmatpush3.bf16.msra.mxu0 %v6146_v4 }
0x13c9   : > { %4850 = vmatprep.subr.bf16.mxu0 %v5408_v5 }
0x13cc   : > { %4852 = vmatpush3.bf16.msra.mxu0 %v6150_v10 }
0x13cd   : > { %4853 = vmatprep.subr.bf16.mxu0 %v5408_v5 }
0x13d0   : > { %4855 = vmatpush3.bf16.msra.mxu0 %v6154_v18 }
0x13d1   : > { %4856 = vmatprep.subr.bf16.mxu0 %v5408_v5 }
0x13d4   : > { %4858 = vmatpush3.bf16.msra.mxu0 %v6158_v22 }
0x13d5   : > { %4883 = vmatprep.subr.bf16.mxu0 %v5408_v5 }
0x1470   : > { %v2265_v23 = vpop.f32.mrb[32].mxu1 }
0x1471   : > { %2294 = vrot.lane.b32.xlu1 %v2265_v23, %s5411_s25  ;;  %v4542_v25 = vpop.f32.mrb[33].mxu1 }
0x1490   : > { %v2452_v26 = vpop.f32.mrb[34].mxu1 }
0x1491   : > { %v6165_v28 = vadd.f32 %v5914_v42, %v2452_v26  ;;  %v4612_v29 = vpop.f32.mrb[35].mxu1  ;;  %v2297_v42 = vsel %vm943_vm1, %v5958_v12, %v2271_v32 }
0x1492   : > { %v2299_v48 = vsel %vm2298_vm3, %v2297_v42, %v2275_v36 }
0x1493   : > { %4649 = vmatpush3.xpose.msk.msra.mxu1 %vm943_vm1, %v6165_v28  ;;  %v2301_v52 = vsel %vm2300_vm4, %v2299_v48, %v2279_v46 }
0x1494   : > { %4653 = vmatprep.subr.mxu1 %v5410_v49 }
0x1496   : > { %4651 = vmatmul.mubr.msk.f32.vlgmr.msra.gmra.mrb[36].mxu1 %vm943_vm1, %v5925_v51  ;;  %v2303_v51 = vsel %vm2302_vm5, %v2301_v52, %v2283_v47 }
0x1497   : > { %4655 = vmatprep.mubr.msk.f32.mxu1 %vm5409_vm0, %v5410_v49  ;;  %v2305_v58 = vsel %vm2304_vm6, %v2303_v51, %v2287_v54 }
0x1498   : > { %v2307_v55 = vsel %vm2306_vm7, %v2305_v58, %v2291_v57 }
0x14e3   : > { %v2295_v6 = vpop.permute.xlu1 %2294 }
0x14e4   : > { %v2309_v13 = vsel %vm2308_vm8, %v2307_v55, %v2295_v6 }
0x14e5   : > { %4576 = vmatmul.mubr.f32.vlgmr.msra.gmra.mrb[4].mxu0 %v2309_v13 }
0x14e6   : > { %4885 = vmatpush3.bf16.msra.mxu0 %v5872_v16  ;;  %4645 = vmatprep.mubr.msk.f32.mxu0 %vm5409_vm0, %v5410_v49 }
0x14e7   : > { %4886 = vmatprep.subr.bf16.mxu0 %v5408_v5 }
0x14ea   : > { %4888 = vmatpush3.bf16.msra.mxu0 %v5878_v21 }
0x14eb   : > { %4889 = vmatprep.subr.bf16.mxu0 %v5408_v5 }
0x14ee   : > { %4891 = vmatpush3.bf16.msra.mxu0 %v5884_v24 }
0x14ef   : > { %4892 = vmatprep.subr.bf16.mxu0 %v5408_v5 }
0x14f2   : > { %4894 = vmatpush3.bf16.msra.mxu0 %v5888_v27 }
0x14f3   : > { %4895 = vmatprep.subr.bf16.mxu0 %v5408_v5 }
0x14f6   : > { %4897 = vmatpush3.bf16.msra.mxu0 %v5892_v30 }
0x14f7   : > { %4898 = vmatprep.subr.bf16.mxu0 %v5408_v5 }
0x14fa   : > { %4900 = vmatpush3.bf16.msra.mxu0 %v5896_v34 }
0x14fb   : > { %4901 = vmatprep.subr.bf16.mxu0 %v5408_v5 }
0x14fe   : > { %4903 = vmatpush3.bf16.msra.mxu0 %v5900_v38 }
0x14ff   : > { %4904 = vmatprep.subr.bf16.mxu0 %v5408_v5 }
0x1502   : > { %4906 = vmatpush3.bf16.msra.mxu0 %v5904_v41 }
0x1503   : > { %4688 = vmatprep.subr.mxu0 %v5410_v49 }
0x1505   : > { %4646 = vmatmul.mubr.f32.vlgmr.msra.gmra.mrb[6].mxu0 %v6125_v31 }
0x1506   : > { %4690 = vmatprep.mubr.msk.f32.mxu0 %vm5409_vm0, %v5410_v49 }
0x1569   : > { %v2595_v16 = vpop.f32.mrb[36].mxu1 }
0x156a   : > { %v2599_v21 = vmul.f32 0.088388346, %v2595_v16  ;;  %v4652_v24 = vpop.f32.mrb[37].mxu1 }
0x156c   : > { %v2600_v27 = vsel %vm1021_vm2, %v2599_v21, -inf }
0x156d   : > { %2601 = vmax.xlane.f32.xlu0 %v2600_v27 }
0x1583   : > { %2684 = vrot.lane.b32.xlu0 %v6165_v28, %s5411_s25 }
0x1587   : > { %2847 = vrot.lane.b32.xlu0 %v6165_v28, %s5412_s13 }
0x15d8   : > { %v2522_v30 = vpop.f32.mrb[6].mxu0 }
0x15d9   : > { %v6209_v34 = vadd.f32 %v5934_v53, %v2522_v30  ;;  %v4647_v38 = vpop.f32.mrb[7].mxu0 }
0x15db   : > { %4654 = vmatpush3.msra.mxu1 %v6209_v34 }
0x15dc   : > { %4658 = vmatprep.subr.mxu1 %v5410_v49 }
0x15fa   : > { %v2602_v41 = vpop.xlane.xlu0 %2601 }
0x15fb   : > { %v2603_v12 = vsub.f32 %v2599_v21, %v2602_v41 }
0x15fd   : > { %v2604_v17 = vmul.f32 1.442695, %v2603_v12 }
0x15fe   : > { %v2685_v56 = vpop.permute.xlu0 %2684 }
0x15ff   : > { %5083 = vpow2.f32 %v2604_v17 }
0x1602   : > { %v2848_v26 = vpop.permute.xlu0 %2847 }
0x1609   : > { %v5084_v31 = vpop.eup %5083 }
0x160a   : > { %v2606_v37 = vsel %vm1021_vm2, %v5084_v31, 0.0 }
0x160b   : > { %2607 = vadd.xlane.f32.xlu1 %v2606_v37 }
0x1698   : > { %v2608_v43 = vpop.xlane.xlu1 %2607 }
0x1699   : > { %5085 = vrcp.f32 %v2608_v43 }
0x16a3   : > { %v5086_v8 = vpop.eup %5085 }
0x16a4   : > { %v2610_v59 = vmul.f32 %v5086_v8, %v5084_v31 }
0x16a6   : > { %4656 = vmatmul.mubr.msk.f32.vlgmr.msra.gmra.mrb[38].mxu1 %vm1021_vm2, %v2610_v59 }
0x16a7   : > { %4659 = vmatpush3.xpose.msk.msra.mxu1 %vm943_vm1, %v2685_v56  ;;  %4660 = vmatprep.mubr.msk.f32.mxu1 %vm5409_vm0, %v5410_v49 }
0x16a8   : > { %4663 = vmatprep.subr.mxu1 %v5410_v49 }
0x16aa   : > { %4661 = vmatmul.mubr.msk.f32.vlgmr.msra.gmra.mrb[40].mxu1 %vm943_vm1, %v5952_v11 }
0x16ab   : > { %4665 = vmatprep.mubr.msk.f32.mxu1 %vm5409_vm0, %v5410_v49 }
0x1779   : > { %v6223_v53 = vpop.f32.mrb[38].mxu1 }
0x177a   : > { %v4657_v7 = vpop.f32.mrb[39].mxu1 }
0x177d   : > { %v2754_v45 = vpop.f32.mrb[40].mxu1 }
0x177e   : > { %v2758_v61 = vmul.f32 0.088388346, %v2754_v45  ;;  %v4662_v40 = vpop.f32.mrb[41].mxu1 }
0x1780   : > { %v2759_v63 = vsel %vm1021_vm2, %v2758_v61, -inf }
0x1781   : > { %2760 = vmax.xlane.f32.xlu1 %v2759_v63 }
0x180e   : > { %v2761_v35 = vpop.xlane.xlu1 %2760 }
0x180f   : > { %v2762_v0 = vsub.f32 %v2758_v61, %v2761_v35 }
0x1811   : > { %v2763_v14 = vmul.f32 1.442695, %v2762_v0 }
0x1813   : > { %5087 = vpow2.f32 %v2763_v14 }
0x181d   : > { %v5088_v15 = vpop.eup %5087 }
0x181e   : > { %v2765_v19 = vsel %vm1021_vm2, %v5088_v15, 0.0 }
0x181f   : > { %2766 = vadd.xlane.f32.xlu1 %v2765_v19 }
0x1830   : > { %2771 = vrot.lane.b32.xlu1 %v6209_v34, %s5411_s25 }
0x18ac   : > { %v2767_v11 = vpop.xlane.xlu1 %2766 }
0x18ad   : > { %5089 = vrcp.f32 %v2767_v11 }
0x18b0   : > { %v2772_v20 = vpop.permute.xlu1 %2771 }
0x18b1   : > { %4664 = vmatpush3.msra.mxu1 %v2772_v20 }
0x18b2   : > { %4668 = vmatprep.subr.mxu1 %v5410_v49 }
0x18b7   : > { %v5090_v23 = vpop.eup %5089 }
0x18b8   : > { %v2769_v25 = vmul.f32 %v5090_v23, %v5088_v15 }
0x18ba   : > { %4666 = vmatmul.mubr.msk.f32.vlgmr.msra.gmra.mrb[42].mxu1 %vm1021_vm2, %v2769_v25 }
0x18bb   : > { %4669 = vmatpush3.xpose.msk.msra.mxu1 %vm943_vm1, %v2848_v26  ;;  %4670 = vmatprep.mubr.msk.f32.mxu1 %vm5409_vm0, %v5410_v49 }
0x18bc   : > { %4673 = vmatprep.subr.mxu1 %v5410_v49 }
0x18be   : > { %4671 = vmatmul.mubr.msk.f32.vlgmr.msra.gmra.mrb[44].mxu1 %vm943_vm1, %v5974_v39 }
0x18bf   : > { %4675 = vmatprep.mubr.msk.f32.mxu1 %vm5409_vm0, %v5410_v49 }
0x198d   : > { %v6239_v29 = vpop.f32.mrb[42].mxu1 }
0x198e   : > { %v4667_v32 = vpop.f32.mrb[43].mxu1 }
0x1991   : > { %v2917_v36 = vpop.f32.mrb[44].mxu1 }
0x1992   : > { %v2921_v46 = vmul.f32 0.088388346, %v2917_v36  ;;  %v4672_v47 = vpop.f32.mrb[45].mxu1 }
0x1994   : > { %v2922_v42 = vsel %vm1021_vm2, %v2921_v46, -inf }
0x1995   : > { %2923 = vmax.xlane.f32.xlu0 %v2922_v42 }
0x19ab   : > { %2933 = vrot.lane.b32.xlu0 %v6209_v34, %s5412_s13 }
0x19af   : > { %3171 = vrot.lane.b32.xlu0 %v6165_v28, %s5414_s15 }
0x19b3   : > { %3333 = vrot.lane.b32.xlu0 %v6165_v28, %s5415_s29 }
0x19b7   : > { %3657 = vrot.lane.b32.xlu0 %v6165_v28, %s5417_s16 }
0x1a22   : > { %v2924_v39 = vpop.xlane.xlu0 %2923 }
0x1a23   : > { %v2925_v48 = vsub.f32 %v2921_v46, %v2924_v39 }
0x1a25   : > { %v2926_v52 = vmul.f32 1.442695, %v2925_v48 }
0x1a26   : > { %v2934_v54 = vpop.permute.xlu0 %2933 }
0x1a27   : > { %5091 = vpow2.f32 %v2926_v52  ;;  %4674 = vmatpush3.msra.mxu1 %v2934_v54 }
0x1a28   : > { %4678 = vmatprep.subr.mxu1 %v5410_v49 }
0x1a2a   : > { %v3172_v51 = vpop.permute.xlu0 %3171 }
0x1a2b   : > { %4689 = vmatpush3.xpose.msk.msra.mxu0 %vm943_vm1, %v3172_v51 }
0x1a2c   : > { %4698 = vmatprep.subr.mxu0 %v5410_v49 }
0x1a2e   : > { %4691 = vmatmul.mubr.msk.f32.vlgmr.msra.gmra.mrb[8].mxu0 %vm943_vm1, %v6018_v33  ;;  %v3334_v57 = vpop.permute.xlu0 %3333 }
0x1a2f   : > { %4699 = vmatpush3.xpose.msk.msra.mxu0 %vm943_vm1, %v3334_v57  ;;  %4700 = vmatprep.mubr.msk.f32.mxu0 %vm5409_vm0, %v5410_v49 }
0x1a30   : > { %4708 = vmatprep.subr.mxu0 %v5410_v49 }
0x1a31   : > { %v5092_v58 = vpop.eup %5091 }
0x1a32   : > { %4701 = vmatmul.mubr.msk.f32.vlgmr.msra.gmra.mrb[10].mxu0 %vm943_vm1, %v6040_v1  ;;  %v2928_v55 = vsel %vm1021_vm2, %v5092_v58, 0.0  ;;  %v3658_v16 = vpop.permute.xlu0 %3657 }
0x1a33   : > { %2929 = vadd.xlane.f32.xlu1 %v2928_v55  ;;  %4710 = vmatprep.mubr.msk.f32.mxu0 %vm5409_vm0, %v5410_v49 }
0x1a44   : > { %3009 = vrot.lane.b32.xlu1 %v6165_v28, %s5413_s18 }
0x1a48   : > { %3495 = vrot.lane.b32.xlu1 %v6165_v28, %s5416_s22 }
0x1ac0   : > { %v2930_v33 = vpop.xlane.xlu1 %2929 }
0x1ac1   : > { %5093 = vrcp.f32 %v2930_v33 }
0x1ac4   : > { %v3010_v6 = vpop.permute.xlu1 %3009 }
0x1ac8   : > { %v3496_v13 = vpop.permute.xlu1 %3495 }
0x1ac9   : > { %4709 = vmatpush3.xpose.msk.msra.mxu0 %vm943_vm1, %v3496_v13 }
0x1aca   : > { %4718 = vmatprep.subr.mxu0 %v5410_v49 }
0x1acb   : > { %v5094_v1 = vpop.eup %5093 }
0x1acc   : > { %v2932_v21 = vmul.f32 %v5094_v1, %v5092_v58  ;;  %4711 = vmatmul.mubr.msk.f32.vlgmr.msra.gmra.mrb[12].mxu0 %vm943_vm1, %v6062_v44 }
0x1acd   : > { %4719 = vmatpush3.xpose.msk.msra.mxu0 %vm943_vm1, %v3658_v16  ;;  %4720 = vmatprep.mubr.msk.f32.mxu0 %vm5409_vm0, %v5410_v49 }
0x1ace   : > { %4676 = vmatmul.mubr.msk.f32.vlgmr.msra.gmra.mrb[46].mxu1 %vm1021_vm2, %v2932_v21  ;;  %4907 = vmatprep.subr.bf16.mxu0 %v5408_v5 }
0x1acf   : > { %4679 = vmatpush3.xpose.msk.msra.mxu1 %vm943_vm1, %v3010_v6  ;;  %4680 = vmatprep.mubr.msk.f32.mxu1 %vm5409_vm0, %v5410_v49 }
0x1ad0   : > { %4721 = vmatmul.mubr.msk.f32.vlgmr.msra.gmra.mrb[14].mxu0 %vm943_vm1, %v6091_v9  ;;  %4683 = vmatprep.subr.mxu1 %v5410_v49 }
0x1ad1   : > { %4909 = vmatpush3.bf16.msra.mxu0 %v6131_v50  ;;  %4760 = vmatprep.mubr.msk.f32.mxu0 %vm5409_vm0, %v5410_v49 }
0x1ad2   : > { %4681 = vmatmul.mubr.msk.f32.vlgmr.msra.gmra.mrb[48].mxu1 %vm943_vm1, %v5996_v2  ;;  %4910 = vmatprep.subr.bf16.mxu0 %v5408_v5 }
0x1ad3   : > { %4685 = vmatprep.mubr.msk.f32.mxu1 %vm5409_vm0, %v5410_v49 }
0x1ad5   : > { %4912 = vmatpush3.bf16.msra.mxu0 %v6134_v3 }
0x1ad6   : > { %4913 = vmatprep.subr.bf16.mxu0 %v5408_v5 }
0x1ad9   : > { %4915 = vmatpush3.bf16.msra.mxu0 %v6138_v60 }
0x1ada   : > { %4916 = vmatprep.subr.bf16.mxu0 %v5408_v5 }
0x1add   : > { %4918 = vmatpush3.bf16.msra.mxu0 %v6142_v62 }
0x1ade   : > { %4919 = vmatprep.subr.bf16.mxu0 %v5408_v5 }
0x1ae1   : > { %4921 = vmatpush3.bf16.msra.mxu0 %v6146_v4 }
0x1ae2   : > { %4922 = vmatprep.subr.bf16.mxu0 %v5408_v5 }
0x1ae5   : > { %4924 = vmatpush3.bf16.msra.mxu0 %v6150_v10 }
0x1ae6   : > { %4925 = vmatprep.subr.bf16.mxu0 %v5408_v5 }
0x1ae9   : > { %4927 = vmatpush3.bf16.msra.mxu0 %v6154_v18 }
0x1aea   : > { %4928 = vmatprep.subr.bf16.mxu0 %v5408_v5 }
0x1aed   : > { %4930 = vmatpush3.bf16.msra.mxu0 %v6158_v22 }
0x1b01   : > { %v3241_v2 = vpop.f32.mrb[8].mxu0 }
0x1b02   : > { %v3245_v44 = vmul.f32 0.088388346, %v3241_v2  ;;  %v4692_v9 = vpop.f32.mrb[9].mxu0 }
0x1b04   : > { %v3246_v50 = vsel %vm1021_vm2, %v3245_v44, -inf }
0x1b05   : > { %3247 = vmax.xlane.f32.xlu0 %v3246_v50  ;;  %v3403_v3 = vpop.f32.mrb[10].mxu0 }
0x1b06   : > { %v3407_v60 = vmul.f32 0.088388346, %v3403_v3  ;;  %v4702_v62 = vpop.f32.mrb[11].mxu0 }
0x1b08   : > { %v3408_v4 = vsel %vm1021_vm2, %v3407_v60, -inf }
0x1b09   : > { %3409 = vmax.xlane.f32.xlu0 %v3408_v4 }
0x1b92   : > { %v3248_v10 = vpop.xlane.xlu0 %3247 }
0x1b93   : > { %v3249_v27 = vsub.f32 %v3245_v44, %v3248_v10 }
0x1b95   : > { %v3250_v5 = vmul.f32 1.442695, %v3249_v27 }
0x1b96   : > { %v3410_v28 = vpop.xlane.xlu0 %3409 }
0x1b97   : > { %v3411_v24 = vsub.f32 %v3407_v60, %v3410_v28 }
0x1b99   : > { %v3412_v18 = vmul.f32 1.442695, %v3411_v24 }
0x1b9b   : > { %5095 = vpow2.f32 %v3412_v18 }
0x1b9c   : > { %5097 = vpow2.f32 %v3250_v5 }
0x1b9f   : > { %v3565_v22 = vpop.f32.mrb[12].mxu0 }
0x1ba0   : > { %v3569_v30 = vmul.f32 0.088388346, %v3565_v22  ;;  %v4712_v38 = vpop.f32.mrb[13].mxu0 }
0x1ba1   : > { %v3005_v41 = vpop.f32.mrb[46].mxu1 }
0x1ba2   : > { %v4677_v12 = vpop.f32.mrb[47].mxu1  ;;  %v3570_v17 = vsel %vm1021_vm2, %v3569_v30, -inf }
0x1ba3   : > { %3571 = vmax.xlane.f32.xlu0 %v3570_v17  ;;  %v3727_v31 = vpop.f32.mrb[14].mxu0 }
0x1ba4   : > { %v4722_v37 = vpop.f32.mrb[15].mxu0  ;;  %v3731_v45 = vmul.f32 0.088388346, %v3727_v31 }
0x1ba5   : > { %v6307_v43 = vpop.eup %5095  ;;  %v3079_v8 = vpop.f32.mrb[48].mxu1 }
0x1ba6   : > { %v3083_v59 = vmul.f32 0.088388346, %v3079_v8  ;;  %v4682_v56 = vpop.f32.mrb[49].mxu1  ;;  %v3414_v7 = vsel %vm1021_vm2, %v6307_v43, 0.0  ;;  %v3732_v40 = vsel %vm1021_vm2, %v3731_v45, -inf  ;;  %v5098_v63 = vpop.eup %5097 }
0x1ba7   : > { %3415 = vadd.xlane.f32.xlu0 %v3414_v7  ;;  %v3252_v35 = vsel %vm1021_vm2, %v5098_v63, 0.0 }
0x1ba8   : > { %v3084_v61 = vsel %vm1021_vm2, %v3083_v59, -inf }
0x1ba9   : > { %3085 = vmax.xlane.f32.xlu1 %v3084_v61 }
0x1bad   : > { %3733 = vmax.xlane.f32.xlu1 %v3732_v40 }
0x1bb1   : > { %3253 = vadd.xlane.f32.xlu1 %v3252_v35 }
0x1c30   : > { %v3572_v0 = vpop.xlane.xlu0 %3571 }
0x1c31   : > { %v3573_v14 = vsub.f32 %v3569_v30, %v3572_v0 }
0x1c33   : > { %v3574_v15 = vmul.f32 1.442695, %v3573_v14 }
0x1c34   : > { %v3416_v51 = vpop.xlane.xlu0 %3415 }
0x1c35   : > { %5099 = vpow2.f32 %v3574_v15 }
0x1c36   : > { %v3086_v19 = vpop.xlane.xlu1 %3085 }
0x1c37   : > { %v3087_v11 = vsub.f32 %v3083_v59, %v3086_v19 }
0x1c39   : > { %v3088_v25 = vmul.f32 1.442695, %v3087_v11 }
0x1c3a   : > { %v3734_v20 = vpop.xlane.xlu1 %3733 }
0x1c3b   : > { %v3735_v23 = vsub.f32 %v3731_v45, %v3734_v20 }
0x1c3d   : > { %v3736_v26 = vmul.f32 1.442695, %v3735_v23 }
0x1c3e   : > { %v3254_v48 = vpop.xlane.xlu1 %3253 }
0x1c3f   : > { %v5100_v32 = vpop.eup %5099  ;;  %5101 = vpow2.f32 %v3736_v26 }
0x1c40   : > { %v3576_v36 = vsel %vm1021_vm2, %v5100_v32, 0.0  ;;  %5103 = vpow2.f32 %v3088_v25 }
0x1c41   : > { %3577 = vadd.xlane.f32.xlu1 %v3576_v36 }
0x1c49   : > { %v5102_v46 = vpop.eup %5101 }
0x1c4a   : > { %v3738_v47 = vsel %vm1021_vm2, %v5102_v46, 0.0  ;;  %v5104_v42 = vpop.eup %5103 }
0x1c4b   : > { %3739 = vadd.xlane.f32.xlu0 %v3738_v47  ;;  %v3090_v39 = vsel %vm1021_vm2, %v5104_v42, 0.0 }
0x1c4f   : > { %3091 = vadd.xlane.f32.xlu0 %v3090_v39 }
0x1c52   : > { %3095 = vrot.lane.b32.xlu1 %v6209_v34, %s5413_s18 }
0x1c56   : > { %3419 = vrot.lane.b32.xlu1 %v6209_v34, %s5415_s29 }
0x1c5a   : > { %3581 = vrot.lane.b32.xlu1 %v6209_v34, %s5416_s22 }
0x1c5e   : > { %3743 = vrot.lane.b32.xlu1 %v6209_v34, %s5417_s16 }
0x1c62   : > { %3824 = vrot.lane.b32.xlu1 %v3005_v41, %s5416_s22 }
0x1c65   : > { %3257 = vrot.lane.b32.xlu0 %v6209_v34, %s5414_s15 }
0x1c69   : > { %3820 = vrot.lane.b32.xlu0 %v6239_v29, %s5417_s16 }
0x1cce   : > { %v3578_v52 = vpop.xlane.xlu1 %3577 }
0x1cd2   : > { %v3096_v54 = vpop.permute.xlu1 %3095 }
0x1cd3   : > { %4684 = vmatpush3.msra.mxu1 %v3096_v54 }
0x1cd4   : > { %4693 = vmatprep.subr.mxu1 %v5410_v49 }
0x1cd6   : > { %v3420_v34 = vpop.permute.xlu1 %3419 }
0x1cd8   : > { %v3740_v57 = vpop.xlane.xlu0 %3739 }
0x1cda   : > { %v3582_v21 = vpop.permute.xlu1 %3581 }
0x1cdc   : > { %v3092_v58 = vpop.xlane.xlu0 %3091 }
0x1cdd   : > { %5105 = vrcp.f32 %v3092_v58 }
0x1cde   : > { %5107 = vrcp.f32 %v3254_v48  ;;  %v3744_v50 = vpop.permute.xlu1 %3743 }
0x1cdf   : > { %5109 = vrcp.f32 %v3416_v51 }
0x1ce0   : > { %5111 = vrcp.f32 %v3578_v52  ;;  %v3258_v13 = vpop.permute.xlu0 %3257 }
0x1ce1   : > { %5113 = vrcp.f32 %v3740_v57 }
0x1ce2   : > { %v3825_v30 = vpop.permute.xlu1 %3824 }
0x1ce4   : > { %v3821_v22 = vpop.permute.xlu0 %3820 }
0x1ce5   : > { %v3847_v41 = vsel %vm943_vm1, %v6223_v53, %v3821_v22  ;;  %v4146_v53 = vld [vmem:[%s6495_s1] ss:$0 sm:$0xff] }
0x1ce6   : > { %v3848_v17 = vsel %vm2298_vm3, %v3847_v41, %v3825_v30  ;;  %v4931_v61 = vadd.f32 %v4146_v53, %v4146_v53 }
0x1ce7   : > { %v5106_v55 = vpop.eup %5105 }
0x1ce8   : > { %v3094_v33 = vmul.f32 %v5106_v55, %v5104_v42  ;;  %v5108_v6 = vpop.eup %5107 }
0x1ce9   : > { %v3256_v29 = vmul.f32 %v5108_v6, %v5098_v63  ;;  %v5110_v1 = vpop.eup %5109 }
0x1cea   : > { %4686 = vmatmul.mubr.msk.f32.vlgmr.msra.gmra.mrb[50].mxu1 %vm1021_vm2, %v3094_v33  ;;  %v3418_v16 = vmul.f32 %v5110_v1, %v6307_v43  ;;  %v5112_v2 = vpop.eup %5111 }
0x1ceb   : > { %4694 = vmatpush3.msra.mxu1 %v3258_v13  ;;  %4695 = vmatprep.mubr.msk.f32.mxu1 %vm5409_vm0, %v5410_v49  ;;  %v3580_v44 = vmul.f32 %v5112_v2, %v5100_v32  ;;  %v5114_v9 = vpop.eup %5113 }
0x1cec   : > { %4703 = vmatprep.subr.mxu1 %v5410_v49  ;;  %v3742_v3 = vmul.f32 %v5114_v9, %v5102_v46 }
0x1cee   : > { %4696 = vmatmul.mubr.msk.f32.vlgmr.msra.gmra.mrb[52].mxu1 %vm1021_vm2, %v3256_v29 }
0x1cef   : > { %4704 = vmatpush3.msra.mxu1 %v3420_v34  ;;  %4705 = vmatprep.mubr.msk.f32.mxu1 %vm5409_vm0, %v5410_v49 }
0x1cf0   : > { %4713 = vmatprep.subr.mxu1 %v5410_v49 }
0x1cf2   : > { %4706 = vmatmul.mubr.msk.f32.vlgmr.msra.gmra.mrb[54].mxu1 %vm1021_vm2, %v3418_v16 }
0x1cf3   : > { %4714 = vmatpush3.msra.mxu1 %v3582_v21  ;;  %4715 = vmatprep.mubr.msk.f32.mxu1 %vm5409_vm0, %v5410_v49 }
0x1cf4   : > { %4723 = vmatprep.subr.mxu1 %v5410_v49 }
0x1cf6   : > { %4716 = vmatmul.mubr.msk.f32.vlgmr.msra.gmra.mrb[56].mxu1 %vm1021_vm2, %v3580_v44 }
0x1cf7   : > { %4724 = vmatpush3.msra.mxu1 %v3744_v50  ;;  %4725 = vmatprep.mubr.msk.f32.mxu1 %vm5409_vm0, %v5410_v49 }
0x1cfa   : > { %4726 = vmatmul.mubr.msk.f32.vlgmr.msra.gmra.mrb[58].mxu1 %vm1021_vm2, %v3742_v3 }
0x1dbd   : > { %v3167_v60 = vpop.f32.mrb[50].mxu1 }
0x1dbe   : > { %3828 = vrot.lane.b32.xlu0 %v3167_v60, %s5415_s29  ;;  %v4687_v62 = vpop.f32.mrb[51].mxu1 }
0x1dc1   : > { %v3329_v4 = vpop.f32.mrb[52].mxu1 }
0x1dc2   : > { %3832 = vrot.lane.b32.xlu1 %v3329_v4, %s5414_s15  ;;  %v4697_v10 = vpop.f32.mrb[53].mxu1 }
0x1dc5   : > { %v3491_v28 = vpop.f32.mrb[54].mxu1 }
0x1dc6   : > { %3836 = vrot.lane.b32.xlu0 %v3491_v28, %s5413_s18  ;;  %v4707_v24 = vpop.f32.mrb[55].mxu1 }
0x1dc9   : > { %v3653_v18 = vpop.f32.mrb[56].mxu1 }
0x1dca   : > { %3840 = vrot.lane.b32.xlu1 %v3653_v18, %s5412_s13  ;;  %v4717_v27 = vpop.f32.mrb[57].mxu1 }
0x1dcd   : > { %v3815_v49 = vpop.f32.mrb[58].mxu1 }
0x1dce   : > { %3844 = vrot.lane.b32.xlu0 %v3815_v49, %s5411_s25  ;;  %v4727_v5 = vpop.f32.mrb[59].mxu1  ;;  %s5325_s25 = scalar_lea.vmem %s5324_s17, 256 }
0x1dcf   : > { %p5327_p5 = scmp.lt.s32.totalorder %s5325_s25, %s5319_s12 }
0x1dd1   : > { %p5328_p2 = por %p5327_p5, %p5326_p8 }
0x1dd3   : > { %p5329_p4 = pnand %p5328_p2, %p5322_p11 }
0x1e30   : > { %v3829_v38 = vpop.permute.xlu0 %3828 }
0x1e31   : > { %v3849_v37 = vsel %vm2300_vm4, %v3848_v17, %v3829_v38 }
0x1e34   : > { %v3833_v12 = vpop.permute.xlu1 %3832 }
0x1e35   : > { %v3850_v8 = vsel %vm2302_vm5, %v3849_v37, %v3833_v12 }
0x1e38   : > { %v3837_v31 = vpop.permute.xlu0 %3836 }
0x1e39   : > { %v3851_v59 = vsel %vm2304_vm6, %v3850_v8, %v3837_v31 }
0x1e3c   : > { %v3841_v43 = vpop.permute.xlu1 %3840 }
0x1e3d   : > { %v3852_v56 = vsel %vm2306_vm7, %v3851_v59, %v3841_v43 }
0x1e40   : > { %v3845_v7 = vpop.permute.xlu0 %3844 }
0x1e41   : > { %v3853_v45 = vsel %vm2308_vm8, %v3852_v56, %v3845_v7 }
0x1e42   : > { %4761 = vmatmul.mubr.f32.vlgmr.msra.gmra.mrb[4].mxu0 %v3853_v45 }
0x1f15   : > { %v3920_v40 = vpop.f32.mrb[4].mxu0 }
0x1f16   : > { %v4932_v63 = vadd.f32 %v4931_v61, %v3920_v40  ;;  %v4762_v35 = vpop.f32.mrb[5].mxu0 }
0x1f18   : > { %3925 = vst [vmem:[%s589_s8] sm:$0xff] %v4932_v63 }
0x1f19   : > { %5332 = shalt.err (!%p5329_p4)
}
0x1f1a   : > { %s5333_s28 = scalar_lea.hbm %s6369_s6, 128  ;;  %s5337_s15 = scalar_lea.hbm %s6496_s10, 256 }
0x1f1b   : > { %p5334_p10 = scmp.ne.s32.totalorder %s6369_s6, %s5333_s28  ;;  %p5338_p12 = scmp.lt.u32.totalorder %s6369_s6, %s6496_s10 }
0x1f1c   : > { %p5339_p0 = scmp.lt.u32.totalorder %s5337_s15, %s5333_s28  ;;  %p5341_p9 = scmp.lt.u32.totalorder %s5333_s28, %s6369_s6 }
0x1f1d   : > { %p5335_p3 = pnand %p5334_p10, %p6497_p13 }
0x1f1e   : > { %p5340_p7 = por %p5339_p0, %p5338_p12 }
0x1f1f   : > { %p5336_p6 = pneg %p5335_p3 }
0x1f20   : > { %p5342_p1 = por %p5341_p9, %p5340_p7 }
0x1f22   : > { %p5343_p11 = pnand %p5342_p1, %p5336_p6 }
0x1f24   : > { %5346 = shalt.err (!%p5343_p11)
}
0x1f25   : > { %4958 = dma.vmem_to_hbm [thread:$0]  (%p6497_p13), %s6371_s30, 128, %s6369_s6, %s3927_s23  }
0x1f26 PF: > { %s6498_s16 = sld [smem:[#allocation20_spill]]  ;;  %s6499_s21 = sld [smem:[#allocation25_spill]] }
0x1f27   : > { %s6500_s5 = sld [smem:[#allocation21_spill]] }
0x1f2c   : > { %s3952_s1 = sand.u32 1, %s6498_s16   ;;  %p6501_p8 = scmp.ne.s32.totalorder %s6499_s21, 0 }
0x1f2d   : > { %p6502_p5 = scmp.ge.s32.totalorder %s6500_s5, 2  ;;  %s3953_s9 = scalar_lea.sflag [#allocation4], %s3952_s1 }
0x1f2f   : > { %p4984_p2 = pnand %p6502_p5, %p6501_p8 }
0x1f31   : > { %5380 = dma.done.wait (!%p4984_p2), %s3953_s9, 128  }
0x1f32   : > { %5382 = vsyncadd (!%p4984_p2), %s3953_s9, 4294967168  ;;  %s6503_s28 = sld [smem:[#allocation22_spill]]  ;;  %s6504_s8 = sld [smem:[#allocation23_spill]] }
0x1f33   : > { %s6505_s25 = smov %s5389_s26  ;;  %s6506_s26 = smov %s5393_s27 }
0x1f38   : > { %p31_p4 = scmp.ge.s32.totalorder %s6503_s28, 4   ;;  %s6507_s27 = smov %s6504_s8 }
0x1f3a   :  { %33 = sbr.rel (!%p31_p4) target bundleno = 18 (0x12), region = 157 }
0x1f41   :  { %3958 = vsyncpa [#allocation3], 1 }
0x1f42   :  { %3960 = vsyncpa [#allocation3 + $0x1], 1 }
0x1f43   :  { %3961 = vsyncpa [#allocation6], 1 }
0x1f44   :  { %3963 = vsyncpa [#allocation6 + $0x1], 1 }
0x1f45   :  { %3964 = vsyncpa [#allocation9], 1 }
0x1f46   :  { %3965 = vsyncpa [#allocation12], 1 }
0x1f47   :  { %3966 = vsyncpa [#allocation4], 1 }
0x1f48   :  { %3968 = vsyncpa [#allocation4 + $0x1], 1 }

</bundles_post_ra>
